<compile_context>
chip_gen: v6e
topology: v6e:2x2x1
jax: 0.10.0
libtpu: 0.0.40
codegen_flags: <defaults>
</compile_context>

<pallas_src>
from functools import partial

import jax
import jax.numpy as jnp
from jax.experimental import pallas as pl
from jax.experimental.pallas import tpu as pltpu

_HIGHEST = jax.lax.Precision.HIGHEST  # match the f32-exact PyTorch matmuls


def _round_up(x, m):
    return (x + m - 1) // m * m


def _choose_bt(B, b_tile):
    """Pick the batch tile.

    * cap at ~B/2 so the grid keeps >= 2 steps (v7x dual-TC sharding),
    * 256-align large tiles (full MXU row blocking), 8-align small ones,
    * never exceed round_up(B, 8).
    """
    bt = min(b_tile, max(pl.cdiv(B, 2), 8))
    bt = (bt // 256) * 256 if bt >= 256 else _round_up(bt, 8)
    return min(bt, _round_up(B, 8))


def _channel_attention_kernel(x_ref, w_in_ref, b_in_ref, w_out_ref, b_out_ref,
                              o_ref, *, precision):
    # x_ref: (Bt, n*c) -- lane-dense tile of the flattened input.
    x = x_ref[...]

    # f1 = ((mean_c(x) @ w1.T + b1) * scale) @ mb, with the pooling, scale and
    # mb all folded into (W_in, b_in) by the wrapper -> one full-width matmul.
    f1 = jnp.dot(x, w_in_ref[...], preferred_element_type=jnp.float32,
                 precision=precision) + b_in_ref[...]            # (Bt, M)

    # Numerically stable softmax over memory blocks.
    f1 = f1 - jnp.max(f1, axis=-1, keepdims=True)
    e = jnp.exp(f1)
    s = jnp.sum(e, axis=-1, keepdims=True)
    inv = pl.reciprocal(s, approx=True)        # EUP slot, free next to the exp
    inv = inv * (2.0 - s * inv)                # 2 Newton steps -> ~f32 exact,
    inv = inv * (2.0 - s * inv)                # negligible cost on (Bt, 1)
    attn = e * inv                                               # (Bt, M)

    # logits = ((attn @ mb.T) @ w2.T + b2) expanded over c; mb.T, w2.T and the
    # c-expansion are folded into (W_out, b_out) -> one full-width matmul.
    logits = jnp.dot(attn, w_out_ref[...], preferred_element_type=jnp.float32,
                     precision=precision) + b_out_ref[...]       # (Bt, n*c)
    y2 = jax.nn.sigmoid(logits)

    # out = x * y2 (y2 already expanded over c); multiply in f32, cast once.
    o_ref[...] = (x.astype(jnp.float32) * y2).astype(o_ref.dtype)


def channel_attention(x, w1, b1, mb, w2, b2, *, b_tile=4096,
                      vmem_limit_bytes=48 * 1024 * 1024,
                      precision=_HIGHEST):
    """x: (b, N, Nwin, p, n, c). Returns the same shape/dtype."""
    b, N, Nwin, p, n, c = x.shape
    mid, M = mb.shape
    assert w1.shape == (mid, n) and w2.shape == (n, mid)
    B = b * N * Nwin * p
    nc = n * c
    f32 = jnp.float32

    # ---- one-time wrapper-side constant folding (outside the hot loop) ----
    scale = float(int(mid)) ** (-0.5)
    # mean-over-c pooling + softmax scale folded into the first Linear, then
    # mb folded in as well:
    #   W_in = [repeat(w1.T, c) * scale / c] @ mb      -> (n*c, M)
    #   b_in = (b1 * scale) @ mb                       -> (1, M)
    w1_eff = jnp.repeat(w1.T.astype(f32), c, axis=0) * (scale / c)    # (nc, mid)
    w_in = jnp.dot(w1_eff, mb.astype(f32), precision=_HIGHEST)        # (nc, M)
    b_in = jnp.dot((b1.astype(f32) * scale).reshape(1, mid),
                   mb.astype(f32), precision=_HIGHEST)                # (1, M)
    # mb.T folded into the second Linear + broadcast-over-c expansion:
    #   W_out = mb.T @ [w2.T expanded over c]          -> (M, n*c)
    w2_eff = jnp.repeat(w2.T.astype(f32), c, axis=1)                  # (mid, nc)
    w_out = jnp.dot(mb.astype(f32).T, w2_eff, precision=_HIGHEST)     # (M, nc)
    b_out = jnp.repeat(b2.astype(f32), c).reshape(1, nc)              # (1, nc)

    # bf16 surrounding model: feed the MXU bf16 weights directly.
    wdt = jnp.bfloat16 if x.dtype == jnp.bfloat16 else f32
    w_in = w_in.astype(wdt)
    w_out = w_out.astype(wdt)

    # ---- lane-dense flatten; NO padding and NO trailing slice.  The grid is
    # cdiv(B, bt); the ragged last block (if any) computes on masked rows that
    # never escape (rows are independent, OOB stores are masked). ----
    xt = x.reshape(B, nc)
    bt = _choose_bt(B, b_tile)
    grid = pl.cdiv(B, bt)

    out = pl.pallas_call(
        partial(_channel_attention_kernel, precision=precision),
        out_shape=jax.ShapeDtypeStruct((B, nc), x.dtype),
        grid_spec=pltpu.PrefetchScalarGridSpec(
            num_scalar_prefetch=0,
            grid=(grid,),
            in_specs=[
                pl.BlockSpec((bt, nc), lambda i: (i, 0)),     # x tile
                pl.BlockSpec((nc, M), lambda i: (0, 0)),      # W_in  (folded)
                pl.BlockSpec((1, M), lambda i: (0, 0)),       # b_in
                pl.BlockSpec((M, nc), lambda i: (0, 0)),      # W_out (folded)
                pl.BlockSpec((1, nc), lambda i: (0, 0)),      # b_out
            ],
            out_specs=pl.BlockSpec((bt, nc), lambda i: (i, 0)),
        ),
        compiler_params=pltpu.CompilerParams(
            dimension_semantics=("parallel",),
            vmem_limit_bytes=vmem_limit_bytes,
        ),
    )(xt, w_in, b_in, w_out, b_out)

    return out.reshape(b, N, Nwin, p, n, c)


def channel_attention_ref(x, w1, b1, mb, w2, b2):
    """Plain-JAX reference mirroring the PyTorch forward (f32-exact matmuls)."""
    b, N, Nwin, p, n, c = x.shape
    mid = mb.shape[0]
    t = x.reshape(-1, n, c).astype(jnp.float32)
    y = jnp.mean(t, axis=-1)                                        # (B, n)
    z = jnp.dot(y, w1.T, precision=_HIGHEST) + b1                   # (B, mid)
    f1 = jnp.dot(z, mb, precision=_HIGHEST) * (float(int(mid)) ** (-0.5))
    attn = jax.nn.softmax(f1, axis=-1)                              # (B, M)
    y1 = jnp.dot(attn, mb.T, precision=_HIGHEST)                    # (B, mid)
    y2 = jax.nn.sigmoid(jnp.dot(y1, w2.T, precision=_HIGHEST) + b2) # (B, n)
    return (t * y2[:, :, None]).reshape(x.shape).astype(x.dtype)


if __name__ == "__main__":
    # Small shapes consistent with the module: num_feat == n, and n*c = 128
    # so the flattened last axis is exactly one lane-width.
    b, N, Nwin, p, n, c = 2, 2, 4, 8, 8, 16         # B = 128
    mid_ch, memory_blocks = 32, 128

    key = jax.random.PRNGKey(0)
    kx, k1, k2, k3, k4, k5 = jax.random.split(key, 6)

    x = jax.random.normal(kx, (b, N, Nwin, p, n, c), dtype=jnp.float32)

    # Deterministic synthetic parameters (Linear-like scaled init).
    w1 = jax.random.normal(k1, (mid_ch, n), dtype=jnp.float32) / jnp.sqrt(n)
    b1 = jax.random.normal(k2, (mid_ch,), dtype=jnp.float32) * 0.01
    mb = jax.random.normal(k3, (mid_ch, memory_blocks), dtype=jnp.float32)
    w2 = jax.random.normal(k4, (n, mid_ch), dtype=jnp.float32) / jnp.sqrt(mid_ch)
    b2 = jax.random.normal(k5, (n,), dtype=jnp.float32) * 0.01

    ref = channel_attention_ref(x, w1, b1, mb, w2, b2)

    # Default tile selection: bt=64 here (>=2 grid steps, divides B exactly).
    out = jax.block_until_ready(channel_attention(x, w1, b1, mb, w2, b2))
    assert out.shape == x.shape and out.dtype == x.dtype
    assert jnp.allclose(out, ref, atol=2e-5, rtol=2e-5), "mismatch vs reference"

    # Ragged-grid path (no wrapper-side pad/slice): bt=48 -> grid=3 with a
    # 32-row-valid last block; masked stores keep the tail from escaping.
    out_ragged = jax.block_until_ready(
        channel_attention(x, w1, b1, mb, w2, b2, b_tile=48))
    assert jnp.allclose(out_ragged, ref, atol=2e-5, rtol=2e-5), \
        "ragged-grid mismatch vs reference"

    print("KERNEL_OK")
</pallas_src>

<mosaic_0001>
module attributes {stable_mosaic.version = 11 : i64} {
  func.func @_channel_attention_kernel(%arg0: i32, %arg1: memref<64x128xf32, #tpu.memory_space<vmem>>, %arg2: memref<128x128xf32, #tpu.memory_space<vmem>>, %arg3: memref<1x128xf32, #tpu.memory_space<vmem>>, %arg4: memref<128x128xf32, #tpu.memory_space<vmem>>, %arg5: memref<1x128xf32, #tpu.memory_space<vmem>>, %arg6: memref<64x128xf32, #tpu.memory_space<vmem>>) attributes {dimension_semantics = [#tpu.dimension_semantics<parallel>], iteration_bounds = array<i64: 2>, scalar_prefetch = 0 : i64, scratch_operands = 0 : i64, tpu.core_type = #tpu.core_type<tc>, window_params = [{transform_indices = @transform_0, window_bounds = array<i64: 64, 128>}, {pipeline_mode = #tpu.pipeline_mode<synchronous>, transform_indices = @transform_1, window_bounds = array<i64: 128, 128>}, {pipeline_mode = #tpu.pipeline_mode<synchronous>, transform_indices = @transform_2, window_bounds = array<i64: 1, 128>}, {pipeline_mode = #tpu.pipeline_mode<synchronous>, transform_indices = @transform_3, window_bounds = array<i64: 128, 128>}, {pipeline_mode = #tpu.pipeline_mode<synchronous>, transform_indices = @transform_4, window_bounds = array<i64: 1, 128>}, {transform_indices = @transform_5, window_bounds = array<i64: 64, 128>}]} {
    %c0 = arith.constant 0 : index
    %c0_0 = arith.constant 0 : index
    %0 = vector.load %arg1[%c0, %c0_0] : memref<64x128xf32, #tpu.memory_space<vmem>>, vector<64x128xf32>
    %c0_1 = arith.constant 0 : index
    %c0_2 = arith.constant 0 : index
    %1 = vector.load %arg2[%c0_1, %c0_2] : memref<128x128xf32, #tpu.memory_space<vmem>>, vector<128x128xf32>
    %cst = arith.constant dense<0.000000e+00> : vector<64x128xf32>
    %2 = tpu.matmul %0, %1, %cst {dimension_numbers = #tpu.dot_dimension_numbers<[1], [0], [0], [1], [0, 0, 1, 1], [], []>, precision = #tpu.contract_precision<fp32>} : vector<64x128xf32>, vector<128x128xf32>, vector<64x128xf32> -> vector<64x128xf32>
    %c0_3 = arith.constant 0 : index
    %c0_4 = arith.constant 0 : index
    %3 = vector.load %arg3[%c0_3, %c0_4] : memref<1x128xf32, #tpu.memory_space<vmem>>, vector<1x128xf32>
    %4 = vector.broadcast %3 : vector<1x128xf32> to vector<64x128xf32>
    %5 = arith.addf %2, %4 : vector<64x128xf32>
    %cst_5 = arith.constant dense<0xFF800000> : vector<64xf32>
    %6 = vector.multi_reduction <maximumf>, %5, %cst_5 [1] : vector<64x128xf32> to vector<64xf32>
    %7 = vector.shape_cast %6 : vector<64xf32> to vector<64x1xf32>
    %8 = vector.broadcast %7 : vector<64x1xf32> to vector<64x128xf32>
    %9 = arith.subf %5, %8 : vector<64x128xf32>
    %10 = math.exp %9 : vector<64x128xf32>
    %cst_6 = arith.constant dense<0.000000e+00> : vector<64xf32>
    %11 = vector.multi_reduction <add>, %10, %cst_6 [1] : vector<64x128xf32> to vector<64xf32>
    %12 = vector.shape_cast %11 : vector<64xf32> to vector<64x1xf32>
    %13 = tpu.reciprocal %12 {approx = true} : vector<64x1xf32> -> vector<64x1xf32>
    %14 = arith.mulf %12, %13 : vector<64x1xf32>
    %cst_7 = arith.constant 2.000000e+00 : f32
    %15 = vector.broadcast %cst_7 : f32 to vector<64x1xf32>
    %16 = arith.subf %15, %14 : vector<64x1xf32>
    %17 = arith.mulf %13, %16 : vector<64x1xf32>
    %18 = arith.mulf %12, %17 : vector<64x1xf32>
    %cst_8 = arith.constant 2.000000e+00 : f32
    %19 = vector.broadcast %cst_8 : f32 to vector<64x1xf32>
    %20 = arith.subf %19, %18 : vector<64x1xf32>
    %21 = arith.mulf %17, %20 : vector<64x1xf32>
    %22 = vector.broadcast %21 : vector<64x1xf32> to vector<64x128xf32>
    %23 = arith.mulf %10, %22 : vector<64x128xf32>
    %c0_9 = arith.constant 0 : index
    %c0_10 = arith.constant 0 : index
    %24 = vector.load %arg4[%c0_9, %c0_10] : memref<128x128xf32, #tpu.memory_space<vmem>>, vector<128x128xf32>
    %cst_11 = arith.constant dense<0.000000e+00> : vector<64x128xf32>
    %25 = tpu.matmul %23, %24, %cst_11 {dimension_numbers = #tpu.dot_dimension_numbers<[1], [0], [0], [1], [0, 0, 1, 1], [], []>, precision = #tpu.contract_precision<fp32>} : vector<64x128xf32>, vector<128x128xf32>, vector<64x128xf32> -> vector<64x128xf32>
    %c0_12 = arith.constant 0 : index
    %c0_13 = arith.constant 0 : index
    %26 = vector.load %arg5[%c0_12, %c0_13] : memref<1x128xf32, #tpu.memory_space<vmem>>, vector<1x128xf32>
    %27 = vector.broadcast %26 : vector<1x128xf32> to vector<64x128xf32>
    %28 = arith.addf %25, %27 : vector<64x128xf32>
    %29 = arith.negf %28 : vector<64x128xf32>
    %30 = math.exp %29 : vector<64x128xf32>
    %cst_14 = arith.constant 1.000000e+00 : f32
    %31 = vector.broadcast %cst_14 : f32 to vector<64x128xf32>
    %32 = arith.addf %31, %30 : vector<64x128xf32>
    %33 = arith.divf %31, %32 : vector<64x128xf32>
    %34 = arith.mulf %0, %33 : vector<64x128xf32>
    %c0_15 = arith.constant 0 : index
    %c0_16 = arith.constant 0 : index
    %35 = vector.load %arg6[%c0_15, %c0_16] : memref<64x128xf32, #tpu.memory_space<vmem>>, vector<64x128xf32>
    tpu.vector_store %arg6[%c0_15, %c0_16], %34 {strides = array<i32>} : memref<64x128xf32, #tpu.memory_space<vmem>>, vector<64x128xf32>,
    return
  }
  func.func @transform_0(%arg0: i32) -> (i32, i32) {
    %c0_i32 = arith.constant 0 : i32
    %c0_i32_0 = arith.constant 0 : i32
    return %arg0, %c0_i32 : i32, i32
  }
  func.func @transform_1(%arg0: i32) -> (i32, i32) {
    %c0_i32 = arith.constant 0 : i32
    %c0_i32_0 = arith.constant 0 : i32
    %c0_i32_1 = arith.constant 0 : i32
    return %c0_i32, %c0_i32_0 : i32, i32
  }
  func.func @transform_2(%arg0: i32) -> (i32, i32) {
    %c0_i32 = arith.constant 0 : i32
    %c0_i32_0 = arith.constant 0 : i32
    %c0_i32_1 = arith.constant 0 : i32
    return %c0_i32, %c0_i32_0 : i32, i32
  }
  func.func @transform_3(%arg0: i32) -> (i32, i32) {
    %c0_i32 = arith.constant 0 : i32
    %c0_i32_0 = arith.constant 0 : i32
    %c0_i32_1 = arith.constant 0 : i32
    return %c0_i32, %c0_i32_0 : i32, i32
  }
  func.func @transform_4(%arg0: i32) -> (i32, i32) {
    %c0_i32 = arith.constant 0 : i32
    %c0_i32_0 = arith.constant 0 : i32
    %c0_i32_1 = arith.constant 0 : i32
    return %c0_i32, %c0_i32_0 : i32, i32
  }
  func.func @transform_5(%arg0: i32) -> (i32, i32) {
    %c0_i32 = arith.constant 0 : i32
    %c0_i32_0 = arith.constant 0 : i32
    return %arg0, %c0_i32 : i32, i32
  }
}

</mosaic_0001>

<bundles_post_ra>
// kernel: tpu_custom_call.1
= control target key start
LH: loop header
LB: loop body
LE: loop exit
PB: predicated region body
PF: predicated region fallthrough
CT: control target
= control target key end

     0   :  { %10 = vsyncpa [#allocation3], 0  ;;  %s4844_s0 = inlined_call_operand.hbm [shape: f32[128,128], index: 0, kind: input, shape index: {}]   ;;  %s4845_s1 = inlined_call_operand.hbm [shape: f32[128,128], index: 1, kind: input, shape index: {}]   ;;  %s4846_s2 = inlined_call_operand.vmem [shape: f32[1,128], index: 2, kind: input, shape index: {}]   ;;  %s4847_s3 = inlined_call_operand.hbm [shape: f32[128,128], index: 3, kind: input, shape index: {}]   ;;  %s4848_s4 = inlined_call_operand.vmem [shape: f32[1,128], index: 4, kind: input, shape index: {}]   ;;  %s4849_s5 = inlined_call_operand.hbm [shape: f32[128,128], index: 5, kind: output, shape index: {}]  }
   0x1   :  { %12 = vsyncpa [#allocation3 + $0x1], 0 }
   0x2   :  { %13 = vsyncpa [#allocation6], 0 }
   0x3   :  { %14 = vsyncpa [#allocation4], 0 }
   0x4   :  { %16 = vsyncpa [#allocation4 + $0x1], 0  ;;  %s3679_s18 = smov 0   ;;  %s3681_s19 = smov 0  }
   0x5   :  { %s3683_s20 = smov 0   ;;  %s3685_s21 = smov 0  }
   0x6 LB: > { %s3700_s22 = sadd.s32 4294967295, %s3639_s21   ;;  %s2502_s23 = sadd.s32 4294967294, %s3639_s21   ;;  %s3639_s21 = sphi %s3685_s21, %s4986_s21   ;;  %s3635_s20 = sphi %s3683_s20, %s4985_s20   ;;  %s3631_s19 = sphi %s3681_s19, %s4984_s19   ;;  %s3627_s18 = sphi %s3679_s18, %s4983_s18  }
   0x7   : > { %p42_p0 = scmp.ne.s32.totalorder %s3631_s19, %s3627_s18  ;;  %p4850_p1 = scmp.eq.s32.totalorder %s3700_s22, 0 }
   0x8   : > { %p150_p2 = scmp.eq.s32.totalorder %s3700_s22, 1  ;;  %p156_p3 = scmp.eq.s32.totalorder %s2502_s23, 1 }
   0x9   : > { %p3709_p4 = por %p4850_p1, %p42_p0  ;;  %p2503_p5 = scmp.ge.s32.totalorder %s3639_s21, 1 }
   0xa   : > { %p3714_p6 = por %p156_p3, %p42_p0  ;;  %p163_p7 = scmp.lt.s32.totalorder %s3639_s21, 3 }
   0xb   : > { %s4912_s24 = scalar_select %p3709_p4, 1, 0 }
   0xc   : > { %s4913_s25 = scalar_select %p3714_p6, 1, 0 }
   0xd   : > { %p3719_p8 = pnand %p2503_p5, %p163_p7  ;;  %s3641_s27 = smov [#allocation5]  }
   0xe   : > { %s175_s28 = sshll.u32 %s3641_s27, 4  ;;  %s3642_s30 = smov [#allocation7]   ;;  %s176_s28 = int_to_ptr.vmem [resolvable:$true] %s175_s28 }
   0xf   : > { %s4914_s26 = scalar_select %p3719_p8, 1, 0 }
  0x10   : > { %p3360_p9 = pneg %p3719_p8  ;;  %s191_s6 = sshll.u32 %s3642_s30, 4  ;;  %s192_s6 = int_to_ptr.vmem [resolvable:$true] %s191_s6 }
  0x11   : > { %s3502_s7 = scalar_lea.vmem %s176_s28, 2048  ;;  %p3510_p5 = scmp.lt.s32.totalorder %s176_s28, %s176_s28 }
  0x12   : > { %p3728_p11 = pnand %p3360_p9, %p4850_p1  ;;  %p3503_p13 = scmp.ne.s32.totalorder %s176_s28, %s3502_s7 }
  0x13   : > { %p3511_p7 = scmp.lt.s32.totalorder %s3502_s7, %s3502_s7 }
  0x14   : > { %p3493_p12 = pneg %p3728_p11 }
  0x15   : > { %p3512_p10 = por %p3511_p7, %p3510_p5 }
  0x16   : > { %p3505_p0 = pnand %p3503_p13, %p3493_p12 }
  0x18   : > { %p3506_p3 = pneg %p3505_p0 }
  0x1a   : > { %p3513_p9 = pnand %p3512_p10, %p3506_p3 }
  0x1c   : > { %3516 = shalt.err (!%p3513_p9)
}
  0x1d   : > { %s4851_s8 = smov 128   ;;  %s3644_s9 = smov 8  }
  0x1e   : > { %3363 = dma.hbm_to_vmem [thread:$0]  (!%p3728_p11), %s4845_s1, 2048, %s176_s28, [#allocation6], %s4851_s8, %s4851_s8, %s3644_s9  }
  0x1f   : > { %s3528_s12 = scalar_lea.vmem %s192_s6, 2048  ;;  %p3536_p10 = scmp.lt.s32.totalorder %s192_s6, %s192_s6 }
  0x20   : > { %p3529_p13 = scmp.ne.s32.totalorder %s192_s6, %s3528_s12  ;;  %p3537_p3 = scmp.lt.s32.totalorder %s3528_s12, %s3528_s12 }
  0x22   : > { %p3531_p0 = pnand %p3529_p13, %p3493_p12  ;;  %p3538_p7 = por %p3537_p3, %p3536_p10 }
  0x24   : > { %p3532_p5 = pneg %p3531_p0 }
  0x26   : > { %p3539_p9 = pnand %p3538_p7, %p3532_p5 }
  0x28   : > { %3542 = shalt.err (!%p3539_p9)
}
  0x29   : > { %3366 = dma.hbm_to_vmem [thread:$0]  (!%p3728_p11), %s4847_s3, 2048, %s192_s6, [#allocation6], %s4851_s8, %s4851_s8, %s3644_s9  }
  0x2a   : > { %s3757_s15 = sadd.s32 1, %s3639_s21   ;;  %s29_s16 = sadd.s32 1, %s3635_s20 }
  0x2b   : > { %s26_s17 = ssub.s32 %s3639_s21, %s3757_s15  ;;  %p36_p12 = scmp.ne.s32.totalorder %s3635_s20, %s3631_s19 }
  0x2c   : > { %p27_p13 = scmp.eq.s32.totalorder %s26_s17, 0  ;;  %p37_p0 = scmp.eq.s32.totalorder %s3639_s21, 0 }
  0x2d   : > { %p3767_p5 = por %p150_p2, %p36_p12  ;;  %p3377_p10 = scmp.lt.s32.totalorder %s3639_s21, 2 }
  0x2e   : > { %s3773_s27 = scalar_select %p27_p13, %s3635_s20, %s29_s16  }
  0x2f   : > { %s4916_s23 = scalar_select %p3767_p5, 1, 0 }
  0x30   : > { %p38_p3 = por %p37_p0, %p36_p12  ;;  %s208_s28 = sand.u32 1, %s3635_s20  }
  0x31   : > { %s2507_s29 = sshll.u32 %s208_s28, 6  ;;  %s2530_s30 = sshll.u32 %s3639_s21, 10 }
  0x32   : > { %s3780_s10 = scalar_lea.hbm %s4844_s0, %s2530_s30  ;;  %s212_s11 = scalar_lea.vmem [#allocation2], %s2507_s29 }
  0x33   : > { %s219_s12 = sshll.u32 %s212_s11, 4  ;;  %p3784_p2 = pnand %p3377_p10, %p38_p3  ;;  %s3782_s12 = int_to_ptr.vmem [resolvable:$true] %s219_s12 }
  0x34   : > { %s3788_s14 = scalar_lea.sflag [#allocation3], %s208_s28  ;;  %s3543_s16 = scalar_lea.hbm %s3780_s10, 1024 }
  0x35   : > { %p3544_p11 = scmp.ne.s32.totalorder %s3780_s10, %s3543_s16  ;;  %p3545_p7 = pneg %p3784_p2 }
  0x36   : > { %s3548_s29 = scalar_lea.hbm %s4844_s0, 2048  ;;  %p3549_p13 = scmp.lt.s32.totalorder %s3780_s10, %s4844_s0 }
  0x37   : > { %p3546_p9 = pnand %p3545_p7, %p3544_p11  ;;  %p3550_p0 = scmp.lt.s32.totalorder %s3548_s29, %s3543_s16 }
  0x39   : > { %p3547_p12 = pneg %p3546_p9  ;;  %p3551_p10 = por %p3550_p0, %p3549_p13 }
  0x3b   : > { %p3552_p3 = pnand %p3551_p10, %p3547_p12 }
  0x3d   : > { %3555 = shalt.err (!%p3552_p3)
}
  0x3e   : > { %s3556_s28 = scalar_lea.vmem %s3782_s12, 1024  ;;  %s3645_s11 = smov [#allocation2]  }
  0x3f   : > { %p3557_p1 = scmp.ne.s32.totalorder %s3782_s12, %s3556_s28  ;;  %s3561_s8 = sshll.u32 %s3645_s11, 4  ;;  %s3562_s8 = int_to_ptr.vmem [resolvable:$false] %s3561_s8 }
  0x40   : > { %s3563_s17 = scalar_lea.vmem %s3562_s8, 2048  ;;  %p3564_p9 = scmp.lt.s32.totalorder %s3782_s12, %s3562_s8 }
  0x41   : > { %p3559_p6 = pnand %p3557_p1, %p3545_p7  ;;  %p3565_p5 = scmp.lt.s32.totalorder %s3563_s17, %s3556_s28 }
  0x43   : > { %p3560_p11 = pneg %p3559_p6  ;;  %p3566_p4 = por %p3565_p5, %p3564_p9 }
  0x45   : > { %p3567_p8 = pnand %p3566_p4, %p3560_p11 }
  0x47   : > { %3570 = shalt.err (!%p3567_p8)
}
  0x48   : > { %s4918_s16 = smov 128   ;;  %p4919_p1 = scmp.ne.s32.totalorder %s4914_s26, 0 }
  0x49   : > { %3370 = dma.hbm_to_vmem [thread:$0]  (!%p3784_p2), %s3780_s10, 1024, %s3782_s12, %s3788_s14, %s4918_s16, %s4918_s16, %s3644_s9  }
  0x4a   : > { %231 = sbr.rel (%p4919_p1) target bundleno = 1080 (0x438), region = 40 }
  0x4f   : > { %s3815_s30 = sand.u32 1, %s3631_s19   ;;  %p4920_p4 = scmp.ne.s32.totalorder %s4912_s24, 0 }
  0x50   : > { %s2511_s8 = sshll.u32 %s3815_s30, 6  ;;  %s234_s29 = scalar_lea.sflag [#allocation3], %s3815_s30 }
  0x51   : > { %s3821_s13 = scalar_lea.vmem [#allocation2], %s2511_s8 }
  0x52   : > { %3614 = dma.done.wait (%p4920_p4), %s234_s29, 1024  }
  0x53   : > { %3616 = vsyncadd (%p4920_p4), %s234_s29, 4294966272  ;;  %p4921_p6 = scmp.eq.s32.totalorder %s3700_s22, 0 }
  0x55   : > { %3618 = dma.done.wait (%p4921_p6), [#allocation6], 4096   ;;  %p4922_p8 = pmov %p4921_p6 }
  0x56   : > { %v297_v0 = vld [vmem:[#allocation5 + $0x78] sm:$0xff]  ;;  %v296_v1 = vld [vmem:[#allocation5 + $0x70] sm:$0xff]  ;;  %v295_v2 = vld [vmem:[#allocation5 + $0x68] sm:$0xff]  ;;  %s4777_s12 = scalar_lea.vmem [#allocation8], %s2511_s8  ;;  %s2531_s14 = sshll.u32 %s3700_s22, 10 }
  0x57   : > { %3620 = vsyncadd (%p4922_p8), [#allocation6], 4294963200  ;;  %v3831_v3 = vand.u32 4294901760, %v297_v0  ;;  %v3833_v4 = vand.u32 4294901760, %v296_v1  ;;  %v3835_v5 = vand.u32 4294901760, %v295_v2  ;;  %v294_v6 = vld [vmem:[#allocation5 + $0x60] sm:$0xff]  ;;  %s4796_s11 = scalar_lea.hbm %s4849_s5, %s2531_s14 }
  0x58   : > { %v293_v7 = vld [vmem:[#allocation5 + $0x58] sm:$0xff]  ;;  %v292_v8 = vld [vmem:[#allocation5 + $0x50] sm:$0xff]  ;;  %v3837_v9 = vand.u32 4294901760, %v294_v6  ;;  %v291_v12 = vld [vmem:[#allocation5 + $0x48] sm:$0xff]  ;;  %s2410_s6 = sshll.u32 %s4777_s12, 4  ;;  %s2397_s22 = scalar_lea.sflag [#allocation4], %s3815_s30  ;;  %s4798_s6 = int_to_ptr.vmem [resolvable:$true] %s2410_s6 }
  0x59   : > { %v3839_v10 = vand.u32 4294901760, %v293_v7  ;;  %v3841_v11 = vand.u32 4294901760, %v292_v8  ;;  %v290_v13 = vld [vmem:[#allocation5 + $0x40] sm:$0xff]  ;;  %2820 = vmatprep.subr.mxu0 %v3831_v3  ;;  %v3845_v14 = vsub.f32 %v297_v0, %v3831_v3  ;;  %v3848_v15 = vsub.f32 %v296_v1, %v3833_v4  ;;  %v289_v18 = vld [vmem:[#allocation5 + $0x38] sm:$0xff]  ;;  %v288_v25 = vld [vmem:[#allocation5 + $0x30] sm:$0xff]  ;;  %s3571_s17 = scalar_lea.vmem %s4798_s6, 1024 }
  0x5a   : > { %v3850_v16 = vand.u32 4294901760, %v291_v12  ;;  %v3853_v17 = vsub.f32 %v295_v2, %v3835_v5  ;;  %2821 = vmatpush3.msra.mxu0 %v3831_v3  ;;  %v3857_v19 = vsub.f32 %v294_v6, %v3837_v9  ;;  %v3872_v24 = vand.u32 4294901760, %v290_v13  ;;  %v287_v35 = vld [vmem:[#allocation5 + $0x28] sm:$0xff]  ;;  %v286_v40 = vld [vmem:[#allocation5 + $0x20] sm:$0xff]  ;;  %v285_v48 = vld [vmem:[#allocation5 + $0x18] sm:$0xff]  ;;  %p3572_p5 = scmp.ne.s32.totalorder %s4798_s6, %s3571_s17  ;;  %p4980_p2 = scmp.ne.s32.totalorder %s4916_s23, 0 }
  0x5b   : > { %v3860_v20 = vsub.f32 %v293_v7, %v3839_v10  ;;  %2822 = vmatprep.subr.mxu0 %v3833_v4  ;;  %v3864_v21 = vand.u32 4294901760, %v3845_v14  ;;  %v3867_v22 = vand.u32 4294901760, %v3848_v15  ;;  %v3878_v27 = vand.u32 4294901760, %v289_v18  ;;  %v274_v49 = vld [vmem:[%s3821_s13] sm:$0xff]  ;;  %v275_v54 = vld [vmem:[%s3821_s13 + $0x8] sm:$0xff]  ;;  %v284_v59 = vld [vmem:[#allocation5 + $0x10] sm:$0xff] }
  0x5c   : > { %v3870_v23 = vand.u32 4294901760, %v3853_v17  ;;  %2823 = vmatpush3.msra.mxu0 %v3833_v4  ;;  %v3876_v26 = vand.u32 4294901760, %v3857_v19  ;;  %v3884_v29 = vsub.f32 %v292_v8, %v3841_v11  ;;  %v3894_v33 = vsub.f32 %v291_v12, %v3850_v16  ;;  %v283_v2 = vld [vmem:[#allocation5 + $0x8] sm:$0xff]  ;;  %p3573_p7 = pnand %p3572_p5, %p4980_p2  ;;  %s3646_s16 = smov [#allocation8]  }
  0x5d   : > { %v3881_v28 = vand.u32 4294901760, %v3860_v20  ;;  %2824 = vmatprep.subr.mxu0 %v3835_v5  ;;  %v470_v30 = vsub.f32 %v3845_v14, %v3864_v21  ;;  %v477_v31 = vsub.f32 %v3848_v15, %v3867_v22  ;;  %v3897_v34 = vand.u32 4294901760, %v288_v25  ;;  %s3575_s8 = sshll.u32 %s3646_s16, 4  ;;  %s3576_s8 = int_to_ptr.vmem [resolvable:$false] %s3575_s8 }
  0x5e   : > { %v484_v32 = vsub.f32 %v3853_v17, %v3870_v23  ;;  %2825 = vmatpush3.msra.mxu0 %v3835_v5  ;;  %v491_v38 = vsub.f32 %v3857_v19, %v3876_v26  ;;  %v3903_v39 = vand.u32 4294901760, %v3884_v29  ;;  %v3909_v42 = vand.u32 4294901760, %v3894_v33  ;;  %p3574_p12 = pneg %p3573_p7  ;;  %s3577_s29 = scalar_lea.vmem %s3576_s8, 2048 }
  0x5f   : > { %2826 = vmatprep.subr.mxu0 %v3837_v9  ;;  %v471_v36 = vand.u32 4294901760, %v470_v30  ;;  %v478_v37 = vand.u32 4294901760, %v477_v31  ;;  %v498_v41 = vsub.f32 %v3860_v20, %v3881_v28  ;;  %v3912_v43 = vsub.f32 %v290_v13, %v3872_v24  ;;  %p3578_p13 = scmp.lt.s32.totalorder %s4798_s6, %s3576_s8  ;;  %p3579_p0 = scmp.lt.s32.totalorder %s3577_s29, %s3571_s17 }
  0x60   : > { %2827 = vmatpush3.msra.mxu0 %v3837_v9  ;;  %v485_v44 = vand.u32 4294901760, %v484_v32  ;;  %v3915_v45 = vand.u32 4294901760, %v287_v35  ;;  %v3918_v46 = vsub.f32 %v289_v18, %v3878_v27  ;;  %v3921_v47 = vand.u32 4294901760, %v286_v40  ;;  %v282_v18 = vld [vmem:[#allocation5] sm:$0xff] }
  0x61   : > { %2828 = vmatprep.subr.mxu0 %v3839_v10  ;;  %2864 = vmatprep.subr.mxu1 %v471_v36  ;;  %v492_v50 = vand.u32 4294901760, %v491_v38  ;;  %v505_v51 = vsub.f32 %v3884_v29, %v3903_v39  ;;  %v3928_v52 = vand.u32 4294901760, %v3912_v43  ;;  %v3931_v53 = vsub.f32 %v288_v25, %v3897_v34  ;;  %p3580_p10 = por %p3579_p0, %p3578_p13 }
  0x62   : > { %2829 = vmatpush3.msra.mxu0 %v3839_v10  ;;  %2865 = vmatpush3.msra.mxu1 %v471_v36  ;;  %v499_v55 = vand.u32 4294901760, %v498_v41  ;;  %v512_v56 = vsub.f32 %v3894_v33, %v3909_v42  ;;  %v3938_v57 = vand.u32 4294901760, %v285_v48  ;;  %v3941_v58 = vand.u32 4294901760, %v3918_v46 }
  0x63   : > { %2830 = vmatprep.subr.mxu0 %v3841_v11  ;;  %2866 = vmatprep.subr.mxu1 %v478_v37  ;;  %v3944_v60 = vsub.f32 %v287_v35, %v3915_v45  ;;  %v3946_v61 = vand.u32 4294901760, %v274_v49  ;;  %v3949_v62 = vand.u32 4294901760, %v275_v54  ;;  %v506_v63 = vand.u32 4294901760, %v505_v51  ;;  %p3581_p3 = pnand %p3580_p10, %p3574_p12 }
  0x64   : > { %2831 = vmatpush3.msra.mxu0 %v3841_v11  ;;  %2867 = vmatpush3.msra.mxu1 %v478_v37  ;;  %v519_v0 = vsub.f32 %v3912_v43, %v3928_v52  ;;  %v3955_v1 = vand.u32 4294901760, %v3931_v53  ;;  %v3958_v6 = vsub.f32 %v286_v40, %v3921_v47  ;;  %v513_v7 = vand.u32 4294901760, %v512_v56 }
  0x65   : > { %2832 = vmatprep.subr.mxu0 %v3850_v16  ;;  %2868 = vmatprep.subr.mxu1 %v485_v44  ;;  %v3961_v8 = vand.u32 4294901760, %v284_v59  ;;  %v526_v12 = vsub.f32 %v3918_v46, %v3941_v58  ;;  %v3967_v13 = vand.u32 4294901760, %v3944_v60  ;;  %v3970_v25 = vsub.f32 %v274_v49, %v3946_v61 }
  0x66   : > { %2833 = vmatpush3.msra.mxu0 %v3850_v16  ;;  %2869 = vmatpush3.msra.mxu1 %v485_v44  ;;  %v3973_v30 = vsub.f32 %v285_v48, %v3938_v57  ;;  %v3976_v31 = vand.u32 4294901760, %v283_v2  ;;  %v3979_v32 = vsub.f32 %v275_v54, %v3949_v62  ;;  %v520_v35 = vand.u32 4294901760, %v519_v0 }
  0x67   : > { %2834 = vmatprep.subr.mxu0 %v3872_v24  ;;  %2870 = vmatprep.subr.mxu1 %v492_v50  ;;  %v533_v36 = vsub.f32 %v3931_v53, %v3955_v1  ;;  %v3985_v37 = vand.u32 4294901760, %v3958_v6  ;;  %v3988_v38 = vand.u32 4294901760, %v282_v18  ;;  %v3991_v40 = vsub.f32 %v284_v59, %v3961_v8 }
  0x68   : > { %2835 = vmatpush3.msra.mxu0 %v3872_v24  ;;  %2871 = vmatpush3.msra.mxu1 %v492_v50  ;;  %v527_v41 = vand.u32 4294901760, %v526_v12  ;;  %v540_v44 = vsub.f32 %v3944_v60, %v3967_v13  ;;  %v4856_v48 = vand.u32 4294901760, %v3970_v25  ;;  %v3998_v49 = vand.u32 4294901760, %v3973_v30 }
  0x69   : > { %2836 = vmatprep.subr.mxu0 %v3878_v27  ;;  %2872 = vmatprep.subr.mxu1 %v499_v55  ;;  %v4855_v50 = vand.u32 4294901760, %v3979_v32  ;;  %v4003_v51 = vsub.f32 %v283_v2, %v3976_v31  ;;  %v534_v54 = vand.u32 4294901760, %v533_v36  ;;  %v4010_v56 = vand.u32 4294901760, %v3991_v40 }
  0x6a   : > { %2837 = vmatpush3.msra.mxu0 %v3878_v27  ;;  %2873 = vmatpush3.msra.mxu1 %v499_v55  ;;  %v547_v55 = vsub.f32 %v3958_v6, %v3985_v37  ;;  %v4013_v59 = vsub.f32 %v282_v18, %v3988_v38  ;;  %v389_v0 = vsub.f32 %v3970_v25, %v4856_v48 }
  0x6b   : > { %2838 = vmatprep.subr.mxu0 %v3897_v34  ;;  %2874 = vmatprep.subr.mxu1 %v506_v63  ;;  %v554_v2 = vsub.f32 %v3973_v30, %v3998_v49  ;;  %v4026_v12 = vand.u32 4294901760, %v4003_v51 }
  0x6c   : > { %2839 = vmatpush3.msra.mxu0 %v3897_v34  ;;  %2875 = vmatpush3.msra.mxu1 %v506_v63  ;;  %v541_v63 = vand.u32 4294901760, %v540_v44  ;;  %v548_v18 = vand.u32 4294901760, %v547_v55  ;;  %v4033_v36 = vand.u32 4294901760, %v4013_v59 }
  0x6d   : > { %2840 = vmatprep.subr.mxu0 %v3915_v45  ;;  %2876 = vmatprep.subr.mxu1 %v513_v7  ;;  %4923 = vst [vmem:[#allocation12_spill] sm:$0xff] %v4026_v12  ;;  %v555_v44 = vand.u32 4294901760, %v554_v2  ;;  %v568_v55 = vsub.f32 %v4003_v51, %v4026_v12  ;;  %v277_v2 = vld [vmem:[%s3821_s13 + $0x18] sm:$0xff] }
  0x6e   : > { %2841 = vmatpush3.msra.mxu0 %v3915_v45  ;;  %2877 = vmatpush3.msra.mxu1 %v513_v7  ;;  %v399_v7 = vsub.f32 %v3979_v32, %v4855_v50  ;;  %v4049_v12 = vand.u32 4294901760, %v277_v2 }
  0x6f   : > { %2842 = vmatprep.subr.mxu0 %v3921_v47  ;;  %2878 = vmatprep.subr.mxu1 %v520_v35 }
  0x70   : > { %2843 = vmatpush3.msra.mxu0 %v3921_v47  ;;  %2879 = vmatpush3.msra.mxu1 %v520_v35  ;;  %v561_v35 = vsub.f32 %v3991_v40, %v4010_v56  ;;  %v400_v50 = vand.u32 4294901760, %v399_v7 }
  0x71   : > { %2844 = vmatprep.subr.mxu0 %v3938_v57  ;;  %2880 = vmatprep.subr.mxu1 %v527_v41 }
  0x72   : > { %2845 = vmatpush3.msra.mxu0 %v3938_v57  ;;  %2881 = vmatpush3.msra.mxu1 %v527_v41  ;;  %v390_v41 = vand.u32 4294901760, %v389_v0  ;;  %v562_v48 = vand.u32 4294901760, %v561_v35  ;;  %v575_v0 = vsub.f32 %v4013_v59, %v4033_v36  ;;  %v278_v35 = vld [vmem:[%s3821_s13 + $0x20] sm:$0xff] }
  0x73   : > { %2846 = vmatprep.subr.mxu0 %v3961_v8  ;;  %2882 = vmatprep.subr.mxu1 %v534_v54 }
  0x74   : > { %2847 = vmatpush3.msra.mxu0 %v3961_v8  ;;  %2883 = vmatpush3.msra.mxu1 %v534_v54  ;;  %v276_v54 = vld [vmem:[%s3821_s13 + $0x10] sm:$0xff] }
  0x75   : > { %2848 = vmatprep.subr.mxu0 %v3976_v31  ;;  %2884 = vmatprep.subr.mxu1 %v541_v63  ;;  %v4046_v7 = vand.u32 4294901760, %v276_v54 }
  0x76   : > { %2849 = vmatpush3.msra.mxu0 %v3976_v31  ;;  %2885 = vmatpush3.msra.mxu1 %v541_v63  ;;  %v569_v63 = vand.u32 4294901760, %v568_v55 }
  0x77   : > { %2850 = vmatprep.subr.mxu0 %v3988_v38  ;;  %2886 = vmatprep.subr.mxu1 %v548_v18 }
  0x78   : > { %2851 = vmatpush3.msra.mxu0 %v3988_v38  ;;  %2887 = vmatpush3.msra.mxu1 %v548_v18  ;;  %v576_v18 = vand.u32 4294901760, %v575_v0  ;;  %v281_v0 = vld [vmem:[%s3821_s13 + $0x38] sm:$0xff] }
  0x79   : > { %2852 = vmatprep.mubr.f32.mxu0 %v390_v41  ;;  %2888 = vmatprep.subr.mxu1 %v555_v44  ;;  %v279_v41 = vld [vmem:[%s3821_s13 + $0x28] sm:$0xff] }
  0x7a   : > { %2908 = vmatprep.subr.mxu0 %v3845_v14  ;;  %2853 = vmatmul.mubr.f32.vlgmr.msra.gmra.mxu0 %v400_v50  ;;  %v4057_v50 = vsub.f32 %v276_v54, %v4046_v7 }
  0x7b   : > { %2889 = vmatpush3.msra.mxu1 %v555_v44  ;;  %2909 = vmatpush3.msra.mxu0 %v3845_v14  ;;  %v4061_v14 = vsub.f32 %v277_v2, %v4049_v12  ;;  %v4063_v44 = vand.u32 4294901760, %v278_v35 }
  0x7c   : > { %2890 = vmatprep.subr.mxu1 %v562_v48  ;;  %2910 = vmatprep.subr.mxu0 %v3848_v15 }
  0x7d   : > { %2891 = vmatpush3.msra.mxu1 %v562_v48  ;;  %2911 = vmatpush3.msra.mxu0 %v3848_v15  ;;  %v4066_v15 = vand.u32 4294901760, %v279_v41  ;;  %v280_v48 = vld [vmem:[%s3821_s13 + $0x30] sm:$0xff]  ;;  %v4859_v55 = vand.u32 4294901760, %v4061_v14  ;;  %v4077_v54 = vsub.f32 %v278_v35, %v4063_v44 }
  0x7e   : > { %2892 = vmatprep.subr.mxu1 %v569_v63  ;;  %2912 = vmatprep.subr.mxu0 %v3853_v17  ;;  %v4085_v2 = vand.u32 4294901760, %v280_v48 }
  0x7f   : > { %2893 = vmatpush3.msra.mxu1 %v569_v63  ;;  %2913 = vmatpush3.msra.mxu0 %v3853_v17  ;;  %v4860_v17 = vand.u32 4294901760, %v4057_v50  ;;  %v428_v35 = vand.u32 4294901760, %v4077_v54 }
  0x80   : > { %2894 = vmatprep.subr.mxu1 %v576_v18  ;;  %2914 = vmatprep.subr.mxu0 %v3857_v19 }
  0x81   : > { %2895 = vmatpush3.msra.mxu1 %v576_v18  ;;  %2896 = vmatprep.mubr.f32.mxu1 %v3946_v61  ;;  %v409_v63 = vsub.f32 %v4057_v50, %v4860_v17  ;;  %v419_v18 = vsub.f32 %v4061_v14, %v4859_v55 }
  0x82   : > { %2915 = vmatpush3.msra.mxu0 %v3857_v19  ;;  %2897 = vmatmul.mubr.f32.vlgmr.msra.gmra.mxu1 %v3949_v62  ;;  %v4083_v19 = vsub.f32 %v279_v41, %v4066_v15  ;;  %v4106_v41 = vsub.f32 %v280_v48, %v4085_v2  ;;  %v429_v48 = vsub.f32 %v4077_v54, %v428_v35 }
  0x83   : > { %2916 = vmatprep.subr.mxu0 %v3860_v20  ;;  %2952 = vmatprep.subr.mxu1 %v3831_v3  ;;  %v410_v55 = vand.u32 4294901760, %v409_v63 }
  0x84   : > { %2917 = vmatpush3.msra.mxu0 %v3860_v20  ;;  %2953 = vmatpush3.msra.mxu1 %v3831_v3  ;;  %v4094_v20 = vand.u32 4294901760, %v281_v0 }
  0x85   : > { %2918 = vmatprep.subr.mxu0 %v3884_v29  ;;  %2954 = vmatprep.subr.mxu1 %v3833_v4 }
  0x86   : > { %2919 = vmatpush3.msra.mxu0 %v3884_v29  ;;  %2955 = vmatpush3.msra.mxu1 %v3833_v4  ;;  %v4861_v29 = vand.u32 4294901760, %v4083_v19  ;;  %v4113_v17 = vsub.f32 %v281_v0, %v4094_v20  ;;  %v448_v0 = vand.u32 4294901760, %v4106_v41 }
  0x87   : > { %2920 = vmatprep.subr.mxu0 %v3894_v33  ;;  %2956 = vmatprep.subr.mxu1 %v3835_v5 }
  0x88   : > { %2921 = vmatpush3.msra.mxu0 %v3894_v33  ;;  %2957 = vmatpush3.msra.mxu1 %v3835_v5  ;;  %v420_v33 = vand.u32 4294901760, %v419_v18  ;;  %v458_v63 = vand.u32 4294901760, %v4113_v17 }
  0x89   : > { %2922 = vmatprep.subr.mxu0 %v3912_v43  ;;  %2958 = vmatprep.subr.mxu1 %v3837_v9 }
  0x8a   : > { %2923 = vmatpush3.msra.mxu0 %v3912_v43  ;;  %2959 = vmatpush3.msra.mxu1 %v3837_v9  ;;  %v439_v43 = vsub.f32 %v4083_v19, %v4861_v29  ;;  %v449_v29 = vsub.f32 %v4106_v41, %v448_v0 }
  0x8b   : > { %2924 = vmatprep.subr.mxu0 %v3918_v46  ;;  %2960 = vmatprep.subr.mxu1 %v3839_v10 }
  0x8c   : > { %2925 = vmatpush3.msra.mxu0 %v3918_v46  ;;  %2961 = vmatpush3.msra.mxu1 %v3839_v10  ;;  %v430_v46 = vand.u32 4294901760, %v429_v48  ;;  %v440_v18 = vand.u32 4294901760, %v439_v43 }
  0x8d   : > { %2926 = vmatprep.subr.mxu0 %v3931_v53  ;;  %2962 = vmatprep.subr.mxu1 %v3841_v11 }
  0x8e   : > { %2855 = vmatprep.mubr.f32.mxu0 %v410_v55  ;;  %2927 = vmatpush3.msra.mxu0 %v3931_v53  ;;  %v459_v53 = vsub.f32 %v4113_v17, %v458_v63  ;;  %v450_v55 = vand.u32 4294901760, %v449_v29 }
  0x8f   : > { %2963 = vmatpush3.msra.mxu1 %v3841_v11  ;;  %2856 = vmatmul.mubr.f32.gmra.mxu0 %v420_v33 }
  0x90   : > { %2928 = vmatprep.subr.mxu0 %v3944_v60  ;;  %2964 = vmatprep.subr.mxu1 %v3850_v16 }
  0x91   : > { %2929 = vmatpush3.msra.mxu0 %v3944_v60  ;;  %2965 = vmatpush3.msra.mxu1 %v3850_v16  ;;  %v460_v60 = vand.u32 4294901760, %v459_v53 }
  0x92   : > { %2930 = vmatprep.subr.mxu0 %v3958_v6  ;;  %2966 = vmatprep.subr.mxu1 %v3872_v24 }
  0x93   : > { %2858 = vmatprep.mubr.f32.mxu0 %v430_v46  ;;  %2931 = vmatpush3.msra.mxu0 %v3958_v6 }
  0x94   : > { %2967 = vmatpush3.msra.mxu1 %v3872_v24  ;;  %2859 = vmatmul.mubr.f32.gmra.mxu0 %v440_v18 }
  0x95   : > { %2932 = vmatprep.subr.mxu0 %v3973_v30  ;;  %2968 = vmatprep.subr.mxu1 %v3878_v27 }
  0x96   : > { %2933 = vmatpush3.msra.mxu0 %v3973_v30  ;;  %2969 = vmatpush3.msra.mxu1 %v3878_v27 }
  0x97   : > { %2899 = vmatprep.mubr.f32.mxu1 %v4046_v7  ;;  %2934 = vmatprep.subr.mxu0 %v3991_v40 }
  0x98   : > { %2970 = vmatprep.subr.mxu1 %v3897_v34  ;;  %2861 = vmatprep.mubr.f32.mxu0 %v450_v55 }
  0x99   : > { %2900 = vmatmul.mubr.f32.gmra.mxu1 %v4049_v12  ;;  %2935 = vmatpush3.msra.mxu0 %v3991_v40  ;;  %v2515_v40 = vld [vmem:[%s4846_s2] ss:$0 sm:$0xff] }
  0x9a   : > { %2971 = vmatpush3.msra.mxu1 %v3897_v34  ;;  %2862 = vmatmul.mubr.f32.gmra.mxu0 %v460_v60 }
  0x9b   : > { %2936 = vmatprep.subr.mxu0 %v4003_v51  ;;  %2972 = vmatprep.subr.mxu1 %v3915_v45 }
  0x9c   : > { %2937 = vmatpush3.msra.mxu0 %v4003_v51  ;;  %2973 = vmatpush3.msra.mxu1 %v3915_v45 }
  0x9d   : > { %2902 = vmatprep.mubr.f32.mxu1 %v4063_v44  ;;  %2938 = vmatprep.subr.mxu0 %v4013_v59 }
  0x9e   : > { %2974 = vmatprep.subr.mxu1 %v3921_v47  ;;  %2903 = vmatmul.mubr.f32.gmra.mxu1 %v4066_v15 }
  0x9f   : > { %2939 = vmatpush3.msra.mxu0 %v4013_v59  ;;  %2940 = vmatprep.mubr.f32.mxu0 %v3970_v25 }
  0xa0   : > { %2975 = vmatpush3.msra.mxu1 %v3921_v47  ;;  %2941 = vmatmul.mubr.f32.vlgmr.msra.gmra.mxu0 %v3979_v32 }
  0xa1   : > { %2976 = vmatprep.subr.mxu1 %v3938_v57  ;;  %2996 = vmatprep.subr.mxu0 %v3864_v21 }
  0xa2   : > { %2977 = vmatpush3.msra.mxu1 %v3938_v57  ;;  %2997 = vmatpush3.msra.mxu0 %v3864_v21  ;;  %v4924_v21 = vand.u32 4294901760, %v3970_v25 }
  0xa3   : > { %2905 = vmatprep.mubr.f32.mxu1 %v4085_v2  ;;  %2978 = vmatprep.subr.mxu1 %v3961_v8 }
  0xa4   : > { %2998 = vmatprep.subr.mxu0 %v3867_v22  ;;  %2906 = vmatmul.mubr.f32.gmra.mxu1 %v4094_v20 }
  0xa5   : > { %2943 = vmatprep.mubr.f32.mxu0 %v4057_v50  ;;  %2979 = vmatpush3.msra.mxu1 %v3961_v8 }
  0xa6   : > { %2999 = vmatpush3.msra.mxu0 %v3867_v22  ;;  %2980 = vmatprep.subr.mxu1 %v3976_v31  ;;  %v4925_v22 = vand.u32 4294901760, %v3979_v32 }
  0xa7   : > { %2944 = vmatmul.mubr.f32.gmra.mxu0 %v4061_v14  ;;  %3000 = vmatprep.subr.mxu0 %v3870_v23 }
  0xa8   : > { %2981 = vmatpush3.msra.mxu1 %v3976_v31  ;;  %3001 = vmatpush3.msra.mxu0 %v3870_v23  ;;  %v4926_v23 = vand.u32 4294901760, %v4057_v50 }
  0xa9   : > { %2982 = vmatprep.subr.mxu1 %v3988_v38  ;;  %3002 = vmatprep.subr.mxu0 %v3876_v26 }
  0xaa   : > { %2946 = vmatprep.mubr.f32.mxu0 %v4077_v54  ;;  %2983 = vmatpush3.msra.mxu1 %v3988_v38 }
  0xab   : > { %2984 = vmatprep.mubr.f32.mxu1 %v4924_v21  ;;  %3003 = vmatpush3.msra.mxu0 %v3876_v26  ;;  %v4927_v26 = vand.u32 4294901760, %v4061_v14 }
  0xac   : > { %2947 = vmatmul.mubr.f32.gmra.mxu0 %v4083_v19  ;;  %2985 = vmatmul.mubr.f32.vlgmr.msra.gmra.mxu1 %v4925_v22 }
  0xad   : > { %3004 = vmatprep.subr.mxu0 %v3881_v28  ;;  %3040 = vmatprep.subr.mxu1 %v3831_v3 }
  0xae   : > { %3005 = vmatpush3.msra.mxu0 %v3881_v28  ;;  %3041 = vmatpush3.msra.mxu1 %v3831_v3  ;;  %v4928_v3 = vand.u32 4294901760, %v4083_v19 }
  0xaf   : > { %3006 = vmatprep.subr.mxu0 %v3903_v39  ;;  %3042 = vmatprep.subr.mxu1 %v3833_v4 }
  0xb0   : > { %2949 = vmatprep.mubr.f32.mxu0 %v4106_v41  ;;  %2987 = vmatprep.mubr.f32.mxu1 %v4926_v23 }
  0xb1   : > { %3007 = vmatpush3.msra.mxu0 %v3903_v39  ;;  %3043 = vmatpush3.msra.mxu1 %v3833_v4  ;;  %v4929_v4 = vld [vmem:[#allocation12_spill] sm:$0xff] }
  0xb2   : > { %2950 = vmatmul.mubr.f32.gmra.mxu0 %v4113_v17  ;;  %2988 = vmatmul.mubr.f32.gmra.mxu1 %v4927_v26 }
  0xb3   : > { %3008 = vmatprep.subr.mxu0 %v3909_v42  ;;  %3044 = vmatprep.subr.mxu1 %v3835_v5 }
  0xb4   : > { %3009 = vmatpush3.msra.mxu0 %v3909_v42  ;;  %3045 = vmatpush3.msra.mxu1 %v3835_v5 }
  0xb5   : > { %3010 = vmatprep.subr.mxu0 %v3928_v52  ;;  %3046 = vmatprep.subr.mxu1 %v3837_v9 }
  0xb6   : > { %2990 = vmatprep.mubr.f32.mxu1 %v428_v35  ;;  %3011 = vmatpush3.msra.mxu0 %v3928_v52 }
  0xb7   : > { %3047 = vmatpush3.msra.mxu1 %v3837_v9  ;;  %3012 = vmatprep.subr.mxu0 %v3941_v58 }
  0xb8   : > { %2991 = vmatmul.mubr.f32.gmra.mxu1 %v4928_v3  ;;  %3048 = vmatprep.subr.mxu1 %v3839_v10 }
  0xb9   : > { %3013 = vmatpush3.msra.mxu0 %v3941_v58  ;;  %3049 = vmatpush3.msra.mxu1 %v3839_v10 }
  0xba   : > { %3014 = vmatprep.subr.mxu0 %v3955_v1  ;;  %3050 = vmatprep.subr.mxu1 %v3841_v11 }
  0xbb   : > { %2993 = vmatprep.mubr.f32.mxu1 %v448_v0  ;;  %3015 = vmatpush3.msra.mxu0 %v3955_v1 }
  0xbc   : > { %3051 = vmatpush3.msra.mxu1 %v3841_v11  ;;  %3016 = vmatprep.subr.mxu0 %v3967_v13 }
  0xbd   : > { %2994 = vmatmul.mubr.f32.gmra.mxu1 %v458_v63  ;;  %3052 = vmatprep.subr.mxu1 %v3850_v16 }
  0xbe   : > { %3017 = vmatpush3.msra.mxu0 %v3967_v13  ;;  %3053 = vmatpush3.msra.mxu1 %v3850_v16 }
  0xbf   : > { %3018 = vmatprep.subr.mxu0 %v3985_v37  ;;  %3054 = vmatprep.subr.mxu1 %v3872_v24 }
  0xc0   : > { %3019 = vmatpush3.msra.mxu0 %v3985_v37  ;;  %3055 = vmatpush3.msra.mxu1 %v3872_v24 }
  0xc1   : > { %3020 = vmatprep.subr.mxu0 %v3998_v49  ;;  %3056 = vmatprep.subr.mxu1 %v3878_v27 }
  0xc2   : > { %3021 = vmatpush3.msra.mxu0 %v3998_v49  ;;  %3057 = vmatpush3.msra.mxu1 %v3878_v27 }
  0xc3   : > { %3022 = vmatprep.subr.mxu0 %v4010_v56  ;;  %3058 = vmatprep.subr.mxu1 %v3897_v34 }
  0xc4   : > { %3023 = vmatpush3.msra.mxu0 %v4010_v56  ;;  %3059 = vmatpush3.msra.mxu1 %v3897_v34 }
  0xc5   : > { %3024 = vmatprep.subr.mxu0 %v4929_v4  ;;  %3060 = vmatprep.subr.mxu1 %v3915_v45 }
  0xc6   : > { %3025 = vmatpush3.msra.mxu0 %v4929_v4  ;;  %3061 = vmatpush3.msra.mxu1 %v3915_v45 }
  0xc7   : > { %3026 = vmatprep.subr.mxu0 %v4033_v36  ;;  %3062 = vmatprep.subr.mxu1 %v3921_v47 }
  0xc8   : > { %3027 = vmatpush3.msra.mxu0 %v4033_v36  ;;  %3028 = vmatprep.mubr.f32.mxu0 %v3946_v61 }
  0xc9   : > { %3063 = vmatpush3.msra.mxu1 %v3921_v47  ;;  %3029 = vmatmul.mubr.f32.vlgmr.msra.gmra.mxu0 %v3949_v62 }
  0xca   : > { %3064 = vmatprep.subr.mxu1 %v3938_v57  ;;  %3031 = vmatprep.mubr.f32.mxu0 %v4046_v7 }
  0xcb   : > { %3065 = vmatpush3.msra.mxu1 %v3938_v57  ;;  %3072 = vmatprep.mubr.f32.mxu1 %v3946_v61 }
  0xcc   : > { %3066 = vmatprep.subr.mxu1 %v3961_v8 }
  0xcd   : > { %3067 = vmatpush3.msra.mxu1 %v3961_v8  ;;  %3032 = vmatmul.mubr.f32.gmra.mxu0 %v4049_v12 }
  0xce   : > { %3068 = vmatprep.subr.mxu1 %v3976_v31  ;;  %3034 = vmatprep.mubr.f32.mxu0 %v4063_v44 }
  0xcf   : > { %3069 = vmatpush3.msra.mxu1 %v3976_v31 }
  0xd0   : > { %3070 = vmatprep.subr.mxu1 %v3988_v38 }
  0xd1   : > { %3071 = vmatpush3.msra.mxu1 %v3988_v38  ;;  %3035 = vmatmul.mubr.f32.gmra.mxu0 %v4066_v15 }
  0xd2   : > { %3073 = vmatmul.mubr.f32.vlgmr.msra.gmra.mxu1 %v3949_v62  ;;  %3037 = vmatprep.mubr.f32.mxu0 %v4085_v2 }
  0xd3   : > { %3075 = vmatprep.mubr.f32.mxu1 %v4046_v7 }
  0xd5   : > { %3038 = vmatmul.mubr.f32.gmra.mxu0 %v4094_v20 }
  0xd6   : > { %3076 = vmatmul.mubr.f32.gmra.mxu1 %v4049_v12 }
  0xd7   : > { %3078 = vmatprep.mubr.f32.mxu1 %v4063_v44 }
  0xda   : > { %3079 = vmatmul.mubr.f32.gmra.mxu1 %v4066_v15 }
  0xdb   : > { %3081 = vmatprep.mubr.f32.mxu1 %v4085_v2 }
  0xde   : > { %3082 = vmatmul.mubr.f32.gmra.mxu1 %v4094_v20 }
 0x13a   : > { %v2854_v5 = vpop.f32.mrf.mxu0 }
 0x13b   : > { %v403_v7 = vadd.f32 %v2854_v5, %v2515_v40 }
 0x13c   : > { %v392_v9 = vpop.f32.mrf.mxu0 }
 0x13d   : > { %v393_v56 = vadd.f32 %v2515_v40, %v392_v9 }
 0x142   : > { %v2898_v11 = vpop.f32.mrf.mxu1 }
 0x143   : > { %v620_v2 = vadd.f32 %v2898_v11, %v403_v7 }
 0x144   : > { %v613_v24 = vpop.f32.mrf.mxu1 }
 0x145   : > { %v614_v50 = vadd.f32 %v613_v24, %v393_v56 }
 0x14f   : > { %v2857_v10 = vpop.f32.mrf.mxu0 }
 0x150   : > { %v423_v54 = vadd.f32 %v2857_v10, %v2515_v40 }
 0x151   : > { %v412_v16 = vpop.f32.mrf.mxu0 }
 0x152   : > { %v413_v14 = vadd.f32 %v2515_v40, %v412_v16 }
 0x154   : > { %v2860_v27 = vpop.f32.mrf.mxu0 }
 0x155   : > { %v443_v63 = vadd.f32 %v2860_v27, %v2515_v40 }
 0x156   : > { %v432_v34 = vpop.f32.mrf.mxu0 }
 0x157   : > { %v433_v20 = vadd.f32 %v2515_v40, %v432_v34 }
 0x159   : > { %v2901_v28 = vpop.f32.mrf.mxu1 }
 0x15a   : > { %v2863_v42 = vpop.f32.mrf.mxu0  ;;  %v632_v46 = vadd.f32 %v2901_v28, %v423_v54 }
 0x15b   : > { %v625_v39 = vpop.f32.mrf.mxu1  ;;  %v463_v10 = vadd.f32 %v2863_v42, %v2515_v40 }
 0x15c   : > { %v452_v47 = vpop.f32.mrf.mxu0  ;;  %v626_v35 = vadd.f32 %v625_v39, %v413_v14 }
 0x15d   : > { %v453_v18 = vadd.f32 %v2515_v40, %v452_v47 }
 0x15e   : > { %v2904_v45 = vpop.f32.mrf.mxu1 }
 0x15f   : > { %v644_v11 = vadd.f32 %v2904_v45, %v443_v63 }
 0x160   : > { %v637_v52 = vpop.f32.mrf.mxu1  ;;  %v2942_v57 = vpop.f32.mrf.mxu0 }
 0x161   : > { %v767_v48 = vadd.f32 %v2942_v57, %v620_v2  ;;  %v638_v60 = vadd.f32 %v637_v52, %v433_v20 }
 0x162   : > { %v759_v61 = vpop.f32.mrf.mxu0 }
 0x163   : > { %v760_v15 = vadd.f32 %v759_v61, %v614_v50 }
 0x164   : > { %v4279_v58 = vpop.f32.mrf.mxu1 }
 0x166   : > { %v649_v62 = vpop.f32.mrf.mxu1 }
 0x167   : > { %v2945_v1 = vpop.f32.mrf.mxu0  ;;  %v650_v16 = vadd.f32 %v649_v62, %v453_v18 }
 0x168   : > { %v781_v3 = vadd.f32 %v2945_v1, %v632_v46  ;;  %v656_v1 = vadd.f32 %v4279_v58, %v463_v10 }
 0x169   : > { %v773_v8 = vpop.f32.mrf.mxu0 }
 0x16a   : > { %v774_v43 = vadd.f32 %v773_v8, %v626_v35 }
 0x16c   : > { %v2986_v6 = vpop.f32.mrf.mxu1  ;;  %v2948_v25 = vpop.f32.mrf.mxu0 }
 0x16d   : > { %v906_v21 = vadd.f32 %v2986_v6, %v767_v48  ;;  %v795_v57 = vadd.f32 %v2948_v25, %v644_v11 }
 0x16e   : > { %v897_v13 = vpop.f32.mrf.mxu1  ;;  %v787_v31 = vpop.f32.mrf.mxu0 }
 0x16f   : > { %v898_v29 = vadd.f32 %v897_v13, %v760_v15  ;;  %v788_v4 = vadd.f32 %v787_v31, %v638_v60 }
 0x172   : > { %v2989_v30 = vpop.f32.mrf.mxu1  ;;  %v4281_v37 = vpop.f32.mrf.mxu0 }
 0x173   : > { %v922_v27 = vadd.f32 %v2989_v30, %v781_v3  ;;  %v809_v30 = vadd.f32 %v4281_v37, %v656_v1  ;;  %v1378_v1 = vld [vmem:[#allocation7 + $0x58] sm:$0xff] }
 0x174   : > { %v913_v32 = vpop.f32.mrf.mxu1  ;;  %v801_v49 = vpop.f32.mrf.mxu0 }
 0x175   : > { %v914_v22 = vadd.f32 %v913_v32, %v774_v43  ;;  %v802_v61 = vadd.f32 %v801_v49, %v650_v16 }
 0x178   : > { %v2992_v38 = vpop.f32.mrf.mxu1 }
 0x179   : > { %v938_v42 = vadd.f32 %v2992_v38, %v795_v57 }
 0x17a   : > { %v929_v51 = vpop.f32.mrf.mxu1 }
 0x17b   : > { %v930_v28 = vadd.f32 %v929_v51, %v788_v4 }
 0x17d   : > { %v4286_v36 = vpop.f32.mrf.mxu1 }
 0x17e   : > { %v954_v49 = vadd.f32 %v4286_v36, %v809_v30 }
 0x17f   : > { %v945_v19 = vpop.f32.mrf.mxu1 }
 0x180   : > { %v946_v45 = vadd.f32 %v945_v19, %v802_v61 }
 0x189   : > { %v3030_v59 = vpop.f32.mrf.mxu0 }
 0x18a   : > { %v1079_v5 = vadd.f32 %v3030_v59, %v906_v21  ;;  %v1382_v21 = vld [vmem:[#allocation7 + $0x78] sm:$0xff] }
 0x18b   : > { %v1072_v12 = vpop.f32.mrf.mxu0 }
 0x18c   : > { %v1073_v0 = vadd.f32 %v1072_v12, %v898_v29 }
 0x18d   : > { %v3033_v44 = vpop.f32.mrf.mxu0 }
 0x18e   : > { %v1091_v6 = vadd.f32 %v3033_v44, %v922_v27 }
 0x18f   : > { %v1084_v17 = vpop.f32.mrf.mxu0 }
 0x190   : > { %v1085_v9 = vadd.f32 %v1084_v17, %v914_v22  ;;  %v4294_v22 = vand.u32 4294901760, %v1382_v21 }
 0x191   : > { %v3036_v41 = vpop.f32.mrf.mxu0 }
 0x192   : > { %v3074_v33 = vpop.f32.mrf.mxu1  ;;  %v1103_v51 = vadd.f32 %v3036_v41, %v938_v42  ;;  %v4302_v4 = vsub.f32 %v1382_v21, %v4294_v22  ;;  %3084 = vmatprep.subr.mxu0 %v4294_v22  ;;  %v1371_v21 = vld [vmem:[#allocation7 + $0x20] sm:$0xff] }
 0x193   : > { %v1096_v53 = vpop.f32.mrf.mxu0  ;;  %v1208_v39 = vadd.f32 %v3074_v33, %v1079_v5  ;;  %3085 = vmatpush3.msra.mxu0 %v4294_v22 }
 0x194   : > { %v1201_v55 = vpop.f32.mrf.mxu1  ;;  %v1097_v8 = vadd.f32 %v1096_v53, %v930_v28  ;;  %v4310_v10 = vand.u32 4294901760, %v4302_v4 }
 0x195   : > { %v1202_v23 = vadd.f32 %v1201_v55, %v1073_v0  ;;  %v3039_v24 = vpop.f32.mrf.mxu0 }
 0x196   : > { %v3077_v26 = vpop.f32.mrf.mxu1  ;;  %v1115_v7 = vadd.f32 %v3039_v24, %v954_v49  ;;  %4930 = vst [vmem:[#allocation12_spill] sm:$0xff] %v4310_v10  ;;  %v1555_v28 = vsub.f32 %v4302_v4, %v4310_v10  ;;  %v1376_v49 = vld [vmem:[#allocation7 + $0x48] sm:$0xff] }
 0x197   : > { %1247 = vmax.xlane.f32.xlu0 %v1202_v23  ;;  %v1108_v13 = vpop.f32.mrf.mxu0  ;;  %v1220_v62 = vadd.f32 %v3077_v26, %v1091_v6  ;;  %v1381_v26 = vld [vmem:[#allocation7 + $0x70] sm:$0xff] }
 0x198   : > { %v1213_v34 = vpop.f32.mrf.mxu1  ;;  %v1109_v56 = vadd.f32 %v1108_v13, %v946_v45  ;;  %v4304_v5 = vand.u32 4294901760, %v1381_v26 }
 0x199   : > { %v1214_v47 = vadd.f32 %v1213_v34, %v1085_v9  ;;  %v1380_v9 = vld [vmem:[#allocation7 + $0x68] sm:$0xff]  ;;  %v1379_v34 = vld [vmem:[#allocation7 + $0x60] sm:$0xff] }
 0x19a   : > { %v3080_v52 = vpop.f32.mrf.mxu1  ;;  %v4313_v11 = vsub.f32 %v1381_v26, %v4304_v5  ;;  %v4315_v16 = vand.u32 4294901760, %v1380_v9  ;;  %3086 = vmatprep.subr.mxu0 %v4304_v5  ;;  %v4331_v57 = vand.u32 4294901760, %v1379_v34 }
 0x19b   : > { %1251 = vmax.xlane.f32.xlu1 %v1214_v47  ;;  %1249 = vmax.xlane.f32.xlu0 %v1208_v39  ;;  %v1232_v59 = vadd.f32 %v3080_v52, %v1103_v51  ;;  %v1556_v52 = vand.u32 4294901760, %v1555_v28  ;;  %v4434_v28 = vand.u32 4294901760, %v1371_v21 }
 0x19c   : > { %v1225_v31 = vpop.f32.mrf.mxu1  ;;  %3087 = vmatpush3.msra.mxu0 %v4304_v5 }
 0x19d   : > { %v1226_v32 = vadd.f32 %v1225_v31, %v1097_v8  ;;  %3088 = vmatprep.subr.mxu0 %v4315_v16  ;;  %v4342_v8 = vsub.f32 %v1379_v34, %v4331_v57  ;;  %v4347_v31 = vand.u32 4294901760, %v1378_v1  ;;  %3128 = vmatprep.subr.mxu1 %v1556_v52 }
 0x19e   : > { %v3083_v40 = vpop.f32.mrf.mxu1  ;;  %3089 = vmatpush3.msra.mxu0 %v4315_v16  ;;  %3129 = vmatpush3.msra.mxu1 %v1556_v52 }
 0x19f   : > { %1253 = vmax.xlane.f32.xlu1 %v1220_v62  ;;  %1255 = vmax.xlane.f32.xlu0 %v1226_v32  ;;  %v1244_v58 = vadd.f32 %v3083_v40, %v1115_v7  ;;  %v1377_v40 = vld [vmem:[#allocation7 + $0x50] sm:$0xff]  ;;  %v4361_v30 = vsub.f32 %v1378_v1, %v4347_v31 }
 0x1a0   : > { %v1237_v25 = vpop.f32.mrf.mxu1  ;;  %3090 = vmatprep.subr.mxu0 %v4331_v57  ;;  %v4363_v51 = vand.u32 4294901760, %v1377_v40 }
 0x1a1   : > { %v1238_v12 = vadd.f32 %v1237_v25, %v1109_v56  ;;  %3091 = vmatpush3.msra.mxu0 %v4331_v57 }
 0x1a2   : > { %3092 = vmatprep.subr.mxu0 %v4347_v31  ;;  %v4374_v7 = vsub.f32 %v1377_v40, %v4363_v51 }
 0x1a3   : > { %1257 = vmax.xlane.f32.xlu1 %v1232_v59  ;;  %1259 = vmax.xlane.f32.xlu0 %v1238_v12 }
 0x1a4   : > { %3093 = vmatpush3.msra.mxu0 %v4347_v31 }
 0x1a5   : > { %3094 = vmatprep.subr.mxu0 %v4363_v51 }
 0x1a6   : > { %3095 = vmatpush3.msra.mxu0 %v4363_v51 }
 0x1a7   : > { %1261 = vmax.xlane.f32.xlu1 %v1244_v58 }
 0x220   : > { %v1248_v38 = vpop.xlane.xlu0 %1247 }
 0x221   : > { %v1263_v50 = vsub.f32 %v1202_v23, %v1248_v38 }
 0x223   : > { %v1271_v14 = vmul.f32 1.442695, %v1263_v50  ;;  %v1375_v50 = vld [vmem:[#allocation7 + $0x40] sm:$0xff] }
 0x224   : > { %v1252_v44 = vpop.xlane.xlu1 %1251  ;;  %v1250_v15 = vpop.xlane.xlu0 %1249 }
 0x225   : > { %3419 = vpow2.f32 %v1271_v14  ;;  %v1265_v37 = vsub.f32 %v1214_v47, %v1252_v44  ;;  %v1264_v17 = vsub.f32 %v1208_v39, %v1250_v15  ;;  %v4326_v39 = vand.u32 4294901760, %v4313_v11 }
 0x226   : > { %v4329_v47 = vsub.f32 %v1380_v9, %v4315_v16  ;;  %v4384_v44 = vand.u32 4294901760, %v4374_v7 }
 0x227   : > { %v1275_v54 = vmul.f32 1.442695, %v1265_v37  ;;  %v1273_v19 = vmul.f32 1.442695, %v1264_v17  ;;  %4931 = vst [vmem:[#allocation13_spill] sm:$0xff] %v4326_v39  ;;  %v1562_v61 = vsub.f32 %v4313_v11, %v4326_v39  ;;  %v4389_v37 = vand.u32 4294901760, %v1375_v50 }
 0x228   : > { %v1254_v2 = vpop.xlane.xlu1 %1253  ;;  %v1256_v20 = vpop.xlane.xlu0 %1255  ;;  %v4339_v6 = vand.u32 4294901760, %v4329_v47  ;;  %4935 = vst [vmem:[#allocation17_spill] sm:$0xff] %v4384_v44  ;;  %v1374_v17 = vld [vmem:[#allocation7 + $0x38] sm:$0xff] }
 0x229   : > { %3421 = vpow2.f32 %v1275_v54  ;;  %v1266_v36 = vsub.f32 %v1220_v62, %v1254_v2  ;;  %v1267_v35 = vsub.f32 %v1226_v32, %v1256_v20  ;;  %v1563_v45 = vand.u32 4294901760, %v1562_v61  ;;  %v1370_v61 = vld [vmem:[#allocation7 + $0x18] sm:$0xff] }
 0x22a   : > { %3423 = vpow2.f32 %v1273_v19  ;;  %4932 = vst [vmem:[#allocation14_spill] sm:$0xff] %v4339_v6  ;;  %v1569_v62 = vsub.f32 %v4329_v47, %v4339_v6  ;;  %v4355_v32 = vand.u32 4294901760, %v4342_v8  ;;  %v1590_v19 = vsub.f32 %v4374_v7, %v4384_v44 }
 0x22b   : > { %v1277_v29 = vmul.f32 1.442695, %v1266_v36  ;;  %v1279_v41 = vmul.f32 1.442695, %v1267_v35  ;;  %3130 = vmatprep.subr.mxu1 %v1563_v45  ;;  %v4398_v20 = vsub.f32 %v1375_v50, %v4389_v37  ;;  %v4401_v36 = vand.u32 4294901760, %v1374_v17  ;;  %v1373_v35 = vld [vmem:[#allocation7 + $0x30] sm:$0xff] }
 0x22c   : > { %v1258_v33 = vpop.xlane.xlu1 %1257  ;;  %v1260_v48 = vpop.xlane.xlu0 %1259  ;;  %4933 = vst [vmem:[#allocation15_spill] sm:$0xff] %v4355_v32  ;;  %v1570_v56 = vand.u32 4294901760, %v1569_v62  ;;  %v1576_v25 = vsub.f32 %v4342_v8, %v4355_v32  ;;  %3131 = vmatpush3.msra.mxu1 %v1563_v45  ;;  %v4446_v62 = vsub.f32 %v1371_v21, %v4434_v28  ;;  %v4448_v40 = vand.u32 4294901760, %v1370_v61 }
 0x22d   : > { %3425 = vpow2.f32 %v1277_v29  ;;  %v1268_v43 = vsub.f32 %v1232_v59, %v1258_v33  ;;  %v1269_v0 = vsub.f32 %v1238_v12, %v1260_v48  ;;  %v4371_v12 = vand.u32 4294901760, %v4361_v30 }
 0x22e   : > { %3427 = vpow2.f32 %v1279_v41  ;;  %v1577_v38 = vand.u32 4294901760, %v1576_v25  ;;  %3132 = vmatprep.subr.mxu1 %v1570_v56  ;;  %v1591_v29 = vand.u32 4294901760, %v1590_v19  ;;  %v4407_v33 = vand.u32 4294901760, %v4398_v20  ;;  %4942 = vst [vmem:[#allocation24_spill] sm:$0xff] %v4446_v62  ;;  %v1369_v25 = vld [vmem:[#allocation7 + $0x10] sm:$0xff] }
 0x22f   : > { %v1281_v63 = vmul.f32 1.442695, %v1268_v43  ;;  %v1283_v46 = vmul.f32 1.442695, %v1269_v0  ;;  %4934 = vst [vmem:[#allocation16_spill] sm:$0xff] %v4371_v12  ;;  %v1583_v14 = vsub.f32 %v4361_v30, %v4371_v12  ;;  %3133 = vmatpush3.msra.mxu1 %v1570_v56  ;;  %v4409_v48 = vand.u32 4294901760, %v1373_v35 }
 0x230   : > { %v1262_v18 = vpop.xlane.xlu1 %1261  ;;  %3134 = vmatprep.subr.mxu1 %v1577_v38  ;;  %4937 = vst [vmem:[#allocation19_spill] sm:$0xff] %v4407_v33  ;;  %v4413_v43 = vsub.f32 %v1374_v17, %v4401_v36  ;;  %v1372_v0 = vld [vmem:[#allocation7 + $0x28] sm:$0xff]  ;;  %v4455_v50 = vand.u32 4294901760, %v4446_v62  ;;  %v4461_v17 = vand.u32 4294901760, %v1369_v25 }
 0x231   : > { %3429 = vpow2.f32 %v1281_v63  ;;  %v1270_v53 = vsub.f32 %v1244_v58, %v1262_v18  ;;  %v4376_v58 = vand.u32 4294901760, %v1376_v49  ;;  %v1584_v54 = vand.u32 4294901760, %v1583_v14  ;;  %3135 = vmatpush3.msra.mxu1 %v1577_v38 }
 0x232   : > { %v4291_v55 = vpop.eup %3419  ;;  %3431 = vpow2.f32 %v1283_v46  ;;  %v1604_v46 = vsub.f32 %v4398_v20, %v4407_v33  ;;  %v4419_v18 = vsub.f32 %v1373_v35, %v4409_v48  ;;  %4943 = vst [vmem:[#allocation25_spill] sm:$0xff] %v4455_v50  ;;  %v4458_v14 = vsub.f32 %v1370_v61, %v4448_v40  ;;  %4945 = vst [vmem:[#allocation27_spill] sm:$0xff] %v4461_v17 }
 0x233   : > { %v1285_v60 = vmul.f32 1.442695, %v1270_v53  ;;  %1287 = vadd.xlane.f32.xlu0 %v4291_v55  ;;  %v4387_v15 = vsub.f32 %v1376_v49, %v4376_v58  ;;  %3096 = vmatprep.subr.mxu0 %v4376_v58  ;;  %v4421_v53 = vand.u32 4294901760, %v1372_v0  ;;  %v1632_v35 = vsub.f32 %v4446_v62, %v4455_v50 }
 0x234   : > { %3097 = vmatpush3.msra.mxu0 %v4376_v58  ;;  %3136 = vmatprep.subr.mxu1 %v1584_v54  ;;  %v1605_v26 = vand.u32 4294901760, %v1604_v46  ;;  %v4429_v9 = vand.u32 4294901760, %v4419_v18  ;;  %4944 = vst [vmem:[#allocation26_spill] sm:$0xff] %v4458_v14 }
 0x235   : > { %3433 = vpow2.f32 %v1285_v60  ;;  %v4395_v2 = vand.u32 4294901760, %v4387_v15  ;;  %3098 = vmatprep.subr.mxu0 %v4389_v37  ;;  %3137 = vmatpush3.msra.mxu1 %v1584_v54  ;;  %v4425_v60 = vand.u32 4294901760, %v4413_v43  ;;  %v4432_v34 = vsub.f32 %v1372_v0, %v4421_v53  ;;  %v1368_v54 = vld [vmem:[#allocation7 + $0x8] sm:$0xff] }
 0x236   : > { %v4296_v23 = vpop.eup %3421  ;;  %3099 = vmatpush3.msra.mxu0 %v4389_v37  ;;  %3138 = vmatprep.subr.mxu1 %v1591_v29  ;;  %4939 = vst [vmem:[#allocation21_spill] sm:$0xff] %v4429_v9  ;;  %v1618_v1 = vsub.f32 %v4419_v18, %v4429_v9  ;;  %v4473_v0 = vsub.f32 %v1369_v25, %v4461_v17  ;;  %v1633_v46 = vand.u32 4294901760, %v1632_v35 }
 0x237   : > { %v4298_v3 = vpop.eup %3423  ;;  %1291 = vadd.xlane.f32.xlu0 %v4296_v23  ;;  %4936 = vst [vmem:[#allocation18_spill] sm:$0xff] %v4395_v2  ;;  %v1597_v41 = vsub.f32 %v4387_v15, %v4395_v2  ;;  %3100 = vmatprep.subr.mxu0 %v4401_v36  ;;  %4938 = vst [vmem:[#allocation20_spill] sm:$0xff] %v4425_v60  ;;  %v1611_v52 = vsub.f32 %v4413_v43, %v4425_v60  ;;  %v4443_v45 = vand.u32 4294901760, %v4432_v34 }
 0x238   : > { %1289 = vadd.xlane.f32.xlu1 %v4298_v3  ;;  %3139 = vmatpush3.msra.mxu1 %v1591_v29  ;;  %4940 = vst [vmem:[#allocation22_spill] sm:$0xff] %v4432_v34  ;;  %v1619_v49 = vand.u32 4294901760, %v1618_v1  ;;  %v4467_v29 = vand.u32 4294901760, %v4458_v14  ;;  %4948 = vst [vmem:[#allocation30_spill] sm:$0xff] %v4473_v0  ;;  %v4485_v61 = vand.u32 4294901760, %v4473_v0 }
 0x239   : > { %v1598_v63 = vand.u32 4294901760, %v1597_v41  ;;  %3101 = vmatpush3.msra.mxu0 %v4401_v36  ;;  %4941 = vst [vmem:[#allocation23_spill] sm:$0xff] %v4443_v45  ;;  %v1612_v56 = vand.u32 4294901760, %v1611_v52  ;;  %v1625_v38 = vsub.f32 %v4432_v34, %v4443_v45  ;;  %v4469_v41 = vand.u32 4294901760, %v1368_v54 }
 0x23a   : > { %v4318_v24 = vpop.eup %3425  ;;  %3102 = vmatprep.subr.mxu0 %v4409_v48  ;;  %4946 = vst [vmem:[#allocation28_spill] sm:$0xff] %v4467_v29  ;;  %v1639_v21 = vsub.f32 %v4458_v14, %v4467_v29  ;;  %4951 = vst [vmem:[#allocation33_spill] sm:$0xff] %v4485_v61 }
 0x23b   : > { %v4321_v27 = vpop.eup %3427  ;;  %3140 = vmatprep.subr.mxu1 %v1598_v63  ;;  %3103 = vmatpush3.msra.mxu0 %v4409_v48  ;;  %v1626_v19 = vand.u32 4294901760, %v1625_v38  ;;  %4947 = vst [vmem:[#allocation29_spill] sm:$0xff] %v4469_v41 }
 0x23c   : > { %1293 = vadd.xlane.f32.xlu1 %v4318_v24  ;;  %1295 = vadd.xlane.f32.xlu0 %v4321_v27  ;;  %v1640_v1 = vand.u32 4294901760, %v1639_v21 }
 0x23d   : > { %3141 = vmatpush3.msra.mxu1 %v1598_v63  ;;  %3104 = vmatprep.subr.mxu0 %v4421_v53  ;;  %v1367_v63 = vld [vmem:[#allocation7] sm:$0xff] }
 0x23e   : > { %v4345_v13 = vpop.eup %3429  ;;  %3142 = vmatprep.subr.mxu1 %v1605_v26  ;;  %3105 = vmatpush3.msra.mxu0 %v4421_v53  ;;  %v4481_v52 = vand.u32 4294901760, %v1367_v63 }
 0x23f   : > { %v4350_v42 = vpop.eup %3431  ;;  %3143 = vmatpush3.msra.mxu1 %v1605_v26  ;;  %3106 = vmatprep.subr.mxu0 %v4434_v28  ;;  %v4479_v26 = vsub.f32 %v1368_v54, %v4469_v41 }
 0x240   : > { %1297 = vadd.xlane.f32.xlu1 %v4345_v13  ;;  %1299 = vadd.xlane.f32.xlu0 %v4350_v42  ;;  %4950 = vst [vmem:[#allocation32_spill] sm:$0xff] %v4481_v52  ;;  %v4492_v25 = vsub.f32 %v1367_v63, %v4481_v52 }
 0x241   : > { %3144 = vmatprep.subr.mxu1 %v1612_v56  ;;  %3107 = vmatpush3.msra.mxu0 %v4434_v28  ;;  %4949 = vst [vmem:[#allocation31_spill] sm:$0xff] %v4479_v26 }
 0x242   : > { %v4368_v59 = vpop.eup %3433  ;;  %3145 = vmatpush3.msra.mxu1 %v1612_v56  ;;  %3108 = vmatprep.subr.mxu0 %v4448_v40  ;;  %v4489_v56 = vand.u32 4294901760, %v4479_v26  ;;  %4953 = vst [vmem:[#allocation35_spill] sm:$0xff] %v4492_v25  ;;  %v4501_v54 = vand.u32 4294901760, %v4492_v25 }
 0x243   : > { %3146 = vmatprep.subr.mxu1 %v1619_v49  ;;  %3109 = vmatpush3.msra.mxu0 %v4448_v40 }
 0x244   : > { %1301 = vadd.xlane.f32.xlu1 %v4368_v59  ;;  %3147 = vmatpush3.msra.mxu1 %v1619_v49  ;;  %4952 = vst [vmem:[#allocation34_spill] sm:$0xff] %v4489_v56  ;;  %v1646_v49 = vsub.f32 %v4473_v0, %v4485_v61  ;;  %v1653_v38 = vsub.f32 %v4479_v26, %v4489_v56  ;;  %4954 = vst [vmem:[#allocation36_spill] sm:$0xff] %v4501_v54 }
 0x245   : > { %3110 = vmatprep.subr.mxu0 %v4461_v17  ;;  %3148 = vmatprep.subr.mxu1 %v1626_v19  ;;  %v1660_v63 = vsub.f32 %v4492_v25, %v4501_v54 }
 0x246   : > { %3111 = vmatpush3.msra.mxu0 %v4461_v17  ;;  %3149 = vmatpush3.msra.mxu1 %v1626_v19  ;;  %v1647_v19 = vand.u32 4294901760, %v1646_v49  ;;  %v1654_v35 = vand.u32 4294901760, %v1653_v38 }
 0x247   : > { %3112 = vmatprep.subr.mxu0 %v4469_v41  ;;  %3150 = vmatprep.subr.mxu1 %v1633_v46 }
 0x248   : > { %3113 = vmatpush3.msra.mxu0 %v4469_v41  ;;  %3151 = vmatpush3.msra.mxu1 %v1633_v46  ;;  %v1661_v46 = vand.u32 4294901760, %v1660_v63 }
 0x249   : > { %3114 = vmatprep.subr.mxu0 %v4481_v52  ;;  %3152 = vmatprep.subr.mxu1 %v1640_v1 }
 0x24a   : > { %3115 = vmatpush3.msra.mxu0 %v4481_v52  ;;  %3153 = vmatpush3.msra.mxu1 %v1640_v1 }
 0x24b   : > { %3172 = vmatprep.subr.mxu0 %v4302_v4  ;;  %3154 = vmatprep.subr.mxu1 %v1647_v19 }
 0x24c   : > { %3155 = vmatpush3.msra.mxu1 %v1647_v19 }
 0x24d   : > { %3156 = vmatprep.subr.mxu1 %v1654_v35 }
 0x24e   : > { %3157 = vmatpush3.msra.mxu1 %v1654_v35 }
 0x24f   : > { %3158 = vmatprep.subr.mxu1 %v1661_v46 }
 0x250   : > { %3159 = vmatpush3.msra.mxu1 %v1661_v46 }
 0x251   : > { %3216 = vmatprep.subr.mxu1 %v4294_v22 }
 0x2bc   : > { %v1288_v21 = vpop.xlane.xlu0 %1287 }
 0x2bd   : > { %3435 = vrcp.f32 %v1288_v21 }
 0x2c0   : > { %v1292_v49 = vpop.xlane.xlu0 %1291 }
 0x2c1   : > { %v1290_v56 = vpop.xlane.xlu1 %1289  ;;  %3437 = vrcp.f32 %v1292_v49 }
 0x2c2   : > { %3439 = vrcp.f32 %v1290_v56 }
 0x2c5   : > { %v1294_v1 = vpop.xlane.xlu1 %1293  ;;  %v1296_v38 = vpop.xlane.xlu0 %1295 }
 0x2c6   : > { %3441 = vrcp.f32 %v1294_v1 }
 0x2c7   : > { %3443 = vrcp.f32 %v1296_v38 }
 0x2c9   : > { %v1298_v54 = vpop.xlane.xlu1 %1297  ;;  %v1300_v61 = vpop.xlane.xlu0 %1299 }
 0x2ca   : > { %v3436_v19 = vpop.eup %3435  ;;  %3445 = vrcp.f32 %v1298_v54 }
 0x2cb   : > { %v1311_v63 = vmul.f32 %v3436_v19, %v1288_v21  ;;  %3447 = vrcp.f32 %v1300_v61 }
 0x2cd   : > { %v1319_v35 = vsub.f32 2.0, %v1311_v63  ;;  %v4509_v46 = vpop.xlane.xlu1 %1301 }
 0x2ce   : > { %v3438_v29 = vpop.eup %3437  ;;  %3449 = vrcp.f32 %v4509_v46 }
 0x2cf   : > { %v3440_v50 = vpop.eup %3439  ;;  %v1327_v45 = vmul.f32 %v3436_v19, %v1319_v35  ;;  %v1313_v9 = vmul.f32 %v3438_v29, %v1292_v49 }
 0x2d0   : > { %v1312_v60 = vmul.f32 %v3440_v50, %v1290_v56 }
 0x2d1   : > { %v1335_v33 = vmul.f32 %v1327_v45, %v1288_v21  ;;  %v1321_v2 = vsub.f32 2.0, %v1313_v9 }
 0x2d2   : > { %v1320_v44 = vsub.f32 2.0, %v1312_v60 }
 0x2d3   : > { %v3442_v12 = vpop.eup %3441  ;;  %v1343_v32 = vsub.f32 2.0, %v1335_v33  ;;  %v1329_v6 = vmul.f32 %v3438_v29, %v1321_v2 }
 0x2d4   : > { %v3444_v39 = vpop.eup %3443  ;;  %v1328_v10 = vmul.f32 %v3440_v50, %v1320_v44  ;;  %v1314_v25 = vmul.f32 %v3442_v12, %v1294_v1 }
 0x2d5   : > { %v1351_v26 = vmul.f32 %v1343_v32, %v1327_v45  ;;  %v1337_v63 = vmul.f32 %v1329_v6, %v1292_v49  ;;  %v1315_v0 = vmul.f32 %v3444_v39, %v1296_v38 }
 0x2d6   : > { %v1336_v14 = vmul.f32 %v1328_v10, %v1290_v56  ;;  %v1322_v52 = vsub.f32 2.0, %v1314_v25 }
 0x2d7   : > { %v3446_v62 = vpop.eup %3445  ;;  %v1359_v41 = vmul.f32 %v4291_v55, %v1351_v26  ;;  %v1345_v19 = vsub.f32 2.0, %v1337_v63  ;;  %v1323_v35 = vsub.f32 2.0, %v1315_v0 }
 0x2d8   : > { %v3448_v34 = vpop.eup %3447  ;;  %v1344_v21 = vsub.f32 2.0, %v1336_v14  ;;  %v1330_v9 = vmul.f32 %v3442_v12, %v1322_v52  ;;  %v1316_v60 = vmul.f32 %v3446_v62, %v1298_v54 }
 0x2d9   : > { %v1353_v17 = vmul.f32 %v1345_v19, %v1329_v6  ;;  %v1331_v33 = vmul.f32 %v3444_v39, %v1323_v35  ;;  %v1317_v2 = vmul.f32 %v3448_v34, %v1300_v61  ;;  %v4513_v29 = vand.u32 4294901760, %v1359_v41 }
 0x2da   : > { %v1352_v44 = vmul.f32 %v1344_v21, %v1328_v10  ;;  %v1338_v32 = vmul.f32 %v1330_v9, %v1294_v1  ;;  %v1324_v45 = vsub.f32 2.0, %v1316_v60 }
 0x2db   : > { %v3450_v50 = vpop.eup %3449  ;;  %v1361_v56 = vmul.f32 %v4296_v23, %v1353_v17  ;;  %v1339_v25 = vmul.f32 %v1331_v33, %v1296_v38  ;;  %v1325_v49 = vsub.f32 2.0, %v1317_v2  ;;  %3160 = vmatprep.mubr.f32.mxu1 %v4513_v29  ;;  %v4518_v55 = vsub.f32 %v1359_v41, %v4513_v29 }
 0x2dc   : > { %v1360_v12 = vmul.f32 %v4298_v3, %v1352_v44  ;;  %v1346_v6 = vsub.f32 2.0, %v1338_v32  ;;  %v1332_v39 = vmul.f32 %v3446_v62, %v1324_v45  ;;  %v1318_v14 = vmul.f32 %v3450_v50, %v4509_v46 }
 0x2dd   : > { %v1347_v0 = vsub.f32 2.0, %v1339_v25  ;;  %v1333_v10 = vmul.f32 %v3448_v34, %v1325_v49  ;;  %v4522_v26 = vand.u32 4294901760, %v1361_v56  ;;  %v1473_v52 = vand.u32 4294901760, %v4518_v55 }
 0x2de   : > { %v4525_v23 = vand.u32 4294901760, %v1360_v12  ;;  %v1354_v17 = vmul.f32 %v1346_v6, %v1330_v9  ;;  %v1340_v1 = vmul.f32 %v1332_v39, %v1298_v54  ;;  %v1326_v38 = vsub.f32 2.0, %v1318_v14 }
 0x2df   : > { %v1355_v63 = vmul.f32 %v1347_v0, %v1331_v33  ;;  %v1341_v41 = vmul.f32 %v1333_v10, %v1300_v61  ;;  %v1474_v3 = vsub.f32 %v4518_v55, %v1473_v52  ;;  %v4531_v62 = vsub.f32 %v1361_v56, %v4522_v26 }
 0x2e0   : > { %v4534_v34 = vsub.f32 %v1360_v12, %v4525_v23  ;;  %v1362_v19 = vmul.f32 %v4318_v24, %v1354_v17  ;;  %v1348_v35 = vsub.f32 2.0, %v1340_v1  ;;  %v1334_v21 = vmul.f32 %v3450_v50, %v1326_v38  ;;  %3161 = vmatmul.mubr.f32.vlgmr.msra.gmra.mxu1 %v4525_v23 }
 0x2e1   : > { %v1363_v54 = vmul.f32 %v4321_v27, %v1355_v63  ;;  %v1349_v9 = vsub.f32 2.0, %v1341_v41  ;;  %3217 = vmatpush3.msra.mxu1 %v4294_v22  ;;  %3163 = vmatprep.mubr.f32.mxu1 %v4522_v26  ;;  %v1475_v61 = vand.u32 4294901760, %v1474_v3  ;;  %v1493_v60 = vand.u32 4294901760, %v4531_v62 }
 0x2e2   : > { %v1356_v33 = vmul.f32 %v1348_v35, %v1332_v39  ;;  %v1342_v2 = vmul.f32 %v1334_v21, %v4509_v46  ;;  %3218 = vmatprep.subr.mxu1 %v4304_v5  ;;  %v4544_v24 = vand.u32 4294901760, %v1362_v19  ;;  %v1483_v44 = vand.u32 4294901760, %v4534_v34 }
 0x2e3   : > { %v1357_v32 = vmul.f32 %v1349_v9, %v1333_v10  ;;  %3219 = vmatpush3.msra.mxu1 %v4304_v5  ;;  %3116 = vmatprep.mubr.f32.mxu0 %v1475_v61  ;;  %v4548_v27 = vand.u32 4294901760, %v1363_v54  ;;  %v1494_v45 = vsub.f32 %v4531_v62, %v1493_v60 }
 0x2e4   : > { %v1364_v50 = vmul.f32 %v4345_v13, %v1356_v33  ;;  %v1350_v56 = vsub.f32 2.0, %v1342_v2  ;;  %3220 = vmatprep.subr.mxu1 %v4315_v16  ;;  %3164 = vmatmul.mubr.f32.gmra.mxu1 %v4544_v24  ;;  %v1484_v46 = vsub.f32 %v4534_v34, %v1483_v44  ;;  %v4560_v25 = vsub.f32 %v1362_v19, %v4544_v24 }
 0x2e5   : > { %v1365_v49 = vmul.f32 %v4350_v42, %v1357_v32  ;;  %3221 = vmatpush3.msra.mxu1 %v4315_v16  ;;  %3166 = vmatprep.mubr.f32.mxu1 %v4548_v27  ;;  %v1495_v12 = vand.u32 4294901760, %v1494_v45  ;;  %v4566_v13 = vsub.f32 %v1363_v54, %v4548_v27 }
 0x2e6   : > { %v1358_v6 = vmul.f32 %v1350_v56, %v1334_v21  ;;  %3222 = vmatprep.subr.mxu1 %v4331_v57  ;;  %v1485_v39 = vand.u32 4294901760, %v1484_v46  ;;  %v4569_v14 = vand.u32 4294901760, %v1364_v50  ;;  %v1503_v0 = vand.u32 4294901760, %v4560_v25 }
 0x2e7   : > { %3223 = vmatpush3.msra.mxu1 %v4331_v57  ;;  %v4573_v10 = vand.u32 4294901760, %v1365_v49  ;;  %v1513_v42 = vand.u32 4294901760, %v4566_v13 }
 0x2e8   : > { %v1366_v17 = vmul.f32 %v4368_v59, %v1358_v6  ;;  %3224 = vmatprep.subr.mxu1 %v4347_v31  ;;  %3117 = vmatmul.mubr.f32.vlgmr.msra.gmra.mxu0 %v1485_v39  ;;  %v1504_v1 = vsub.f32 %v4560_v25, %v1503_v0  ;;  %v4582_v38 = vsub.f32 %v1364_v50, %v4569_v14 }
 0x2e9   : > { %3167 = vmatmul.mubr.f32.gmra.mxu1 %v4569_v14  ;;  %3173 = vmatpush3.msra.mxu0 %v4302_v4  ;;  %v1514_v63 = vsub.f32 %v4566_v13, %v1513_v42  ;;  %v4590_v59 = vsub.f32 %v1365_v49, %v4573_v10 }
 0x2ea   : > { %3225 = vmatpush3.msra.mxu1 %v4347_v31  ;;  %3119 = vmatprep.mubr.f32.mxu0 %v1495_v12  ;;  %v1505_v41 = vand.u32 4294901760, %v1504_v1  ;;  %v4593_v3 = vand.u32 4294901760, %v1366_v17  ;;  %v1523_v19 = vand.u32 4294901760, %v4582_v38 }
 0x2eb   : > { %3169 = vmatprep.mubr.f32.mxu1 %v4573_v10  ;;  %3174 = vmatprep.subr.mxu0 %v4313_v11  ;;  %v1533_v4 = vand.u32 4294901760, %v4590_v59  ;;  %v1515_v35 = vand.u32 4294901760, %v1514_v63 }
 0x2ec   : > { %3226 = vmatprep.subr.mxu1 %v4363_v51  ;;  %3175 = vmatpush3.msra.mxu0 %v4313_v11  ;;  %v1524_v21 = vsub.f32 %v4582_v38, %v1523_v19  ;;  %v4605_v54 = vsub.f32 %v1366_v17, %v4593_v3 }
 0x2ed   : > { %3227 = vmatpush3.msra.mxu1 %v4363_v51  ;;  %3176 = vmatprep.subr.mxu0 %v4329_v47  ;;  %v1534_v9 = vsub.f32 %v4590_v59, %v1533_v4 }
 0x2ee   : > { %3228 = vmatprep.subr.mxu1 %v4376_v58  ;;  %3120 = vmatmul.mubr.f32.gmra.mxu0 %v1505_v41  ;;  %v1543_v11 = vand.u32 4294901760, %v4605_v54  ;;  %v1525_v61 = vand.u32 4294901760, %v1524_v21  ;;  %v2516_v41 = vld [vmem:[%s4848_s4] ss:$0 sm:$0xff] }
 0x2ef   : > { %3170 = vmatmul.mubr.f32.gmra.mxu1 %v4593_v3  ;;  %3177 = vmatpush3.msra.mxu0 %v4329_v47  ;;  %v1535_v2 = vand.u32 4294901760, %v1534_v9 }
 0x2f0   : > { %3229 = vmatpush3.msra.mxu1 %v4376_v58  ;;  %3122 = vmatprep.mubr.f32.mxu0 %v1515_v35  ;;  %v1544_v33 = vsub.f32 %v4605_v54, %v1543_v11 }
 0x2f1   : > { %3178 = vmatprep.subr.mxu0 %v4342_v8  ;;  %3230 = vmatprep.subr.mxu1 %v4389_v37 }
 0x2f2   : > { %3248 = vmatprep.mubr.f32.mxu1 %v1473_v52  ;;  %3179 = vmatpush3.msra.mxu0 %v4342_v8  ;;  %v1545_v47 = vand.u32 4294901760, %v1544_v33  ;;  %v4955_v8 = vld [vmem:[#allocation27_spill] sm:$0xff]  ;;  %v4973_v52 = vld [vmem:[#allocation21_spill] sm:$0xff] }
 0x2f3   : > { %3231 = vmatpush3.msra.mxu1 %v4389_v37  ;;  %3180 = vmatprep.subr.mxu0 %v4361_v30 }
 0x2f4   : > { %3232 = vmatprep.subr.mxu1 %v4401_v36  ;;  %3123 = vmatmul.mubr.f32.gmra.mxu0 %v1525_v61 }
 0x2f5   : > { %3181 = vmatpush3.msra.mxu0 %v4361_v30  ;;  %3233 = vmatpush3.msra.mxu1 %v4401_v36  ;;  %v4956_v30 = vld [vmem:[#allocation22_spill] sm:$0xff] }
 0x2f6   : > { %3125 = vmatprep.mubr.f32.mxu0 %v1535_v2  ;;  %3182 = vmatprep.subr.mxu0 %v4374_v7 }
 0x2f7   : > { %3234 = vmatprep.subr.mxu1 %v4409_v48  ;;  %3183 = vmatpush3.msra.mxu0 %v4374_v7  ;;  %v4957_v7 = vld [vmem:[#allocation29_spill] sm:$0xff] }
 0x2f8   : > { %3235 = vmatpush3.msra.mxu1 %v4409_v48  ;;  %3184 = vmatprep.subr.mxu0 %v4387_v15 }
 0x2f9   : > { %3236 = vmatprep.subr.mxu1 %v4421_v53  ;;  %3126 = vmatmul.mubr.f32.gmra.mxu0 %v1545_v47 }
 0x2fa   : > { %3185 = vmatpush3.msra.mxu0 %v4387_v15  ;;  %3237 = vmatpush3.msra.mxu1 %v4421_v53  ;;  %v4958_v15 = vld [vmem:[#allocation24_spill] sm:$0xff] }
 0x2fb   : > { %3186 = vmatprep.subr.mxu0 %v4398_v20  ;;  %3204 = vmatprep.mubr.f32.mxu0 %v4518_v55  ;;  %v4962_v55 = vld [vmem:[#allocation31_spill] sm:$0xff] }
 0x2fc   : > { %3238 = vmatprep.subr.mxu1 %v4434_v28  ;;  %3187 = vmatpush3.msra.mxu0 %v4398_v20  ;;  %v4959_v20 = vld [vmem:[#allocation32_spill] sm:$0xff] }
 0x2fd   : > { %3239 = vmatpush3.msra.mxu1 %v4434_v28  ;;  %3188 = vmatprep.subr.mxu0 %v4413_v43 }
 0x2fe   : > { %3240 = vmatprep.subr.mxu1 %v4448_v40  ;;  %3189 = vmatpush3.msra.mxu0 %v4413_v43  ;;  %v4960_v43 = vld [vmem:[#allocation26_spill] sm:$0xff] }
 0x2ff   : > { %3241 = vmatpush3.msra.mxu1 %v4448_v40  ;;  %3190 = vmatprep.subr.mxu0 %v4419_v18 }
 0x300   : > { %3242 = vmatprep.subr.mxu1 %v4955_v8  ;;  %3191 = vmatpush3.msra.mxu0 %v4419_v18  ;;  %v4961_v18 = vld [vmem:[#allocation30_spill] sm:$0xff] }
 0x301   : > { %3243 = vmatpush3.msra.mxu1 %v4955_v8  ;;  %3192 = vmatprep.subr.mxu0 %v4956_v30 }
 0x302   : > { %3244 = vmatprep.subr.mxu1 %v4957_v7  ;;  %3193 = vmatpush3.msra.mxu0 %v4956_v30 }
 0x303   : > { %3245 = vmatpush3.msra.mxu1 %v4957_v7  ;;  %3194 = vmatprep.subr.mxu0 %v4958_v15 }
 0x304   : > { %3246 = vmatprep.subr.mxu1 %v4959_v20  ;;  %3195 = vmatpush3.msra.mxu0 %v4958_v15 }
 0x305   : > { %3247 = vmatpush3.msra.mxu1 %v4959_v20  ;;  %3196 = vmatprep.subr.mxu0 %v4960_v43 }
 0x306   : > { %3249 = vmatmul.mubr.f32.vlgmr.msra.gmra.mxu1 %v1483_v44  ;;  %3304 = vmatprep.subr.mxu1 %v4294_v22 }
 0x307   : > { %3197 = vmatpush3.msra.mxu0 %v4960_v43  ;;  %3251 = vmatprep.mubr.f32.mxu1 %v1493_v60 }
 0x308   : > { %3305 = vmatpush3.msra.mxu1 %v4294_v22  ;;  %3198 = vmatprep.subr.mxu0 %v4961_v18  ;;  %v4963_v22 = vld [vmem:[#allocation35_spill] sm:$0xff] }
 0x309   : > { %3306 = vmatprep.subr.mxu1 %v4304_v5  ;;  %3199 = vmatpush3.msra.mxu0 %v4961_v18 }
 0x30a   : > { %3307 = vmatpush3.msra.mxu1 %v4304_v5  ;;  %3200 = vmatprep.subr.mxu0 %v4962_v55  ;;  %v4964_v5 = vld [vmem:[#allocation12_spill] sm:$0xff] }
 0x30b   : > { %3252 = vmatmul.mubr.f32.gmra.mxu1 %v1503_v0  ;;  %3308 = vmatprep.subr.mxu1 %v4315_v16 }
 0x30c   : > { %3201 = vmatpush3.msra.mxu0 %v4962_v55  ;;  %3254 = vmatprep.mubr.f32.mxu1 %v1513_v42 }
 0x30d   : > { %3309 = vmatpush3.msra.mxu1 %v4315_v16  ;;  %3202 = vmatprep.subr.mxu0 %v4963_v22  ;;  %v4965_v16 = vld [vmem:[#allocation13_spill] sm:$0xff] }
 0x30e   : > { %3310 = vmatprep.subr.mxu1 %v4331_v57  ;;  %3203 = vmatpush3.msra.mxu0 %v4963_v22 }
 0x30f   : > { %3311 = vmatpush3.msra.mxu1 %v4331_v57  ;;  %3205 = vmatmul.mubr.f32.vlgmr.msra.gmra.mxu0 %v4534_v34  ;;  %v4966_v57 = vld [vmem:[#allocation14_spill] sm:$0xff]  ;;  %v4979_v34 = vld [vmem:[#allocation36_spill] sm:$0xff] }
 0x310   : > { %3255 = vmatmul.mubr.f32.gmra.mxu1 %v1523_v19  ;;  %3260 = vmatprep.subr.mxu0 %v4964_v5 }
 0x311   : > { %3312 = vmatprep.subr.mxu1 %v4347_v31  ;;  %3207 = vmatprep.mubr.f32.mxu0 %v4531_v62  ;;  %v4978_v62 = vld [vmem:[#allocation34_spill] sm:$0xff] }
 0x312   : > { %3257 = vmatprep.mubr.f32.mxu1 %v1533_v4  ;;  %3261 = vmatpush3.msra.mxu0 %v4964_v5 }
 0x313   : > { %3313 = vmatpush3.msra.mxu1 %v4347_v31  ;;  %3262 = vmatprep.subr.mxu0 %v4965_v16  ;;  %v4967_v31 = vld [vmem:[#allocation15_spill] sm:$0xff] }
 0x314   : > { %3314 = vmatprep.subr.mxu1 %v4363_v51  ;;  %3263 = vmatpush3.msra.mxu0 %v4965_v16 }
 0x315   : > { %3315 = vmatpush3.msra.mxu1 %v4363_v51  ;;  %3208 = vmatmul.mubr.f32.gmra.mxu0 %v4560_v25  ;;  %v4968_v51 = vld [vmem:[#allocation16_spill] sm:$0xff] }
 0x316   : > { %3258 = vmatmul.mubr.f32.gmra.mxu1 %v1543_v11  ;;  %3264 = vmatprep.subr.mxu0 %v4966_v57 }
 0x317   : > { %3316 = vmatprep.subr.mxu1 %v4376_v58  ;;  %3210 = vmatprep.mubr.f32.mxu0 %v4566_v13 }
 0x318   : > { %3265 = vmatpush3.msra.mxu0 %v4966_v57  ;;  %3317 = vmatpush3.msra.mxu1 %v4376_v58  ;;  %v4969_v58 = vld [vmem:[#allocation17_spill] sm:$0xff] }
 0x319   : > { %3336 = vmatprep.mubr.f32.mxu1 %v4513_v29  ;;  %3266 = vmatprep.subr.mxu0 %v4967_v31 }
 0x31a   : > { %3318 = vmatprep.subr.mxu1 %v4389_v37  ;;  %3267 = vmatpush3.msra.mxu0 %v4967_v31 }
 0x31b   : > { %3319 = vmatpush3.msra.mxu1 %v4389_v37  ;;  %3211 = vmatmul.mubr.f32.gmra.mxu0 %v4582_v38  ;;  %v4970_v37 = vld [vmem:[#allocation18_spill] sm:$0xff] }
 0x31c   : > { %3268 = vmatprep.subr.mxu0 %v4968_v51  ;;  %3320 = vmatprep.subr.mxu1 %v4401_v36 }
 0x31d   : > { %3213 = vmatprep.mubr.f32.mxu0 %v4590_v59  ;;  %3269 = vmatpush3.msra.mxu0 %v4968_v51 }
 0x31e   : > { %3321 = vmatpush3.msra.mxu1 %v4401_v36  ;;  %3270 = vmatprep.subr.mxu0 %v4969_v58  ;;  %v4971_v36 = vld [vmem:[#allocation19_spill] sm:$0xff] }
 0x31f   : > { %3322 = vmatprep.subr.mxu1 %v4409_v48  ;;  %3271 = vmatpush3.msra.mxu0 %v4969_v58 }
 0x320   : > { %3323 = vmatpush3.msra.mxu1 %v4409_v48  ;;  %3214 = vmatmul.mubr.f32.gmra.mxu0 %v4605_v54  ;;  %v4972_v48 = vld [vmem:[#allocation20_spill] sm:$0xff] }
 0x321   : > { %3272 = vmatprep.subr.mxu0 %v4970_v37  ;;  %3324 = vmatprep.subr.mxu1 %v4421_v53 }
 0x322   : > { %3273 = vmatpush3.msra.mxu0 %v4970_v37  ;;  %3292 = vmatprep.mubr.f32.mxu0 %v4513_v29  ;;  %v4977_v29 = vld [vmem:[#allocation33_spill] sm:$0xff] }
 0x323   : > { %3325 = vmatpush3.msra.mxu1 %v4421_v53  ;;  %3274 = vmatprep.subr.mxu0 %v4971_v36  ;;  %v4974_v53 = vld [vmem:[#allocation23_spill] sm:$0xff] }
 0x324   : > { %3326 = vmatprep.subr.mxu1 %v4434_v28  ;;  %3275 = vmatpush3.msra.mxu0 %v4971_v36 }
 0x325   : > { %3327 = vmatpush3.msra.mxu1 %v4434_v28  ;;  %3276 = vmatprep.subr.mxu0 %v4972_v48  ;;  %v4975_v28 = vld [vmem:[#allocation25_spill] sm:$0xff] }
 0x326   : > { %3328 = vmatprep.subr.mxu1 %v4448_v40  ;;  %3277 = vmatpush3.msra.mxu0 %v4972_v48 }
 0x327   : > { %3329 = vmatpush3.msra.mxu1 %v4448_v40  ;;  %3278 = vmatprep.subr.mxu0 %v4973_v52  ;;  %v4976_v40 = vld [vmem:[#allocation28_spill] sm:$0xff] }
 0x328   : > { %3330 = vmatprep.subr.mxu1 %v4955_v8  ;;  %3279 = vmatpush3.msra.mxu0 %v4973_v52 }
 0x329   : > { %3331 = vmatpush3.msra.mxu1 %v4955_v8  ;;  %3280 = vmatprep.subr.mxu0 %v4974_v53 }
 0x32a   : > { %3332 = vmatprep.subr.mxu1 %v4957_v7  ;;  %3281 = vmatpush3.msra.mxu0 %v4974_v53 }
 0x32b   : > { %3333 = vmatpush3.msra.mxu1 %v4957_v7  ;;  %3282 = vmatprep.subr.mxu0 %v4975_v28 }
 0x32c   : > { %3334 = vmatprep.subr.mxu1 %v4959_v20  ;;  %3283 = vmatpush3.msra.mxu0 %v4975_v28 }
 0x32d   : > { %3335 = vmatpush3.msra.mxu1 %v4959_v20  ;;  %3284 = vmatprep.subr.mxu0 %v4976_v40 }
 0x32e   : > { %3337 = vmatmul.mubr.f32.vlgmr.msra.gmra.mxu1 %v4525_v23  ;;  %3285 = vmatpush3.msra.mxu0 %v4976_v40 }
 0x32f   : > { %3339 = vmatprep.mubr.f32.mxu1 %v4522_v26  ;;  %3286 = vmatprep.subr.mxu0 %v4977_v29 }
 0x330   : > { %3287 = vmatpush3.msra.mxu0 %v4977_v29 }
 0x331   : > { %3288 = vmatprep.subr.mxu0 %v4978_v62 }
 0x332   : > { %3340 = vmatmul.mubr.f32.gmra.mxu1 %v4544_v24  ;;  %3289 = vmatpush3.msra.mxu0 %v4978_v62 }
 0x333   : > { %3342 = vmatprep.mubr.f32.mxu1 %v4548_v27  ;;  %3290 = vmatprep.subr.mxu0 %v4979_v34 }
 0x334   : > { %3291 = vmatpush3.msra.mxu0 %v4979_v34 }
 0x335   : > { %3293 = vmatmul.mubr.f32.vlgmr.msra.gmra.mxu0 %v4525_v23 }
 0x336   : > { %3343 = vmatmul.mubr.f32.gmra.mxu1 %v4569_v14  ;;  %3295 = vmatprep.mubr.f32.mxu0 %v4522_v26 }
 0x337   : > { %3345 = vmatprep.mubr.f32.mxu1 %v4573_v10 }
 0x339   : > { %3296 = vmatmul.mubr.f32.gmra.mxu0 %v4544_v24 }
 0x33a   : > { %3346 = vmatmul.mubr.f32.gmra.mxu1 %v4593_v3  ;;  %3298 = vmatprep.mubr.f32.mxu0 %v4548_v27 }
 0x33d   : > { %3299 = vmatmul.mubr.f32.gmra.mxu0 %v4569_v14 }
 0x33e   : > { %3301 = vmatprep.mubr.f32.mxu0 %v4573_v10 }
 0x341   : > { %3302 = vmatmul.mubr.f32.gmra.mxu0 %v4593_v3 }
 0x3a0   : > { %v3162_v60 = vpop.f32.mrf.mxu1 }
 0x3a2   : > { %v1698_v23 = vpop.f32.mrf.mxu1 }
 0x3a4   : > { %v3165_v32 = vpop.f32.mrf.mxu1 }
 0x3a6   : > { %v1710_v26 = vpop.f32.mrf.mxu1 }
 0x3a8   : > { %v3118_v44 = vpop.f32.mrf.mxu0 }
 0x3a9   : > { %v3168_v56 = vpop.f32.mrf.mxu1  ;;  %v1488_v4 = vadd.f32 %v3118_v44, %v2516_v41 }
 0x3aa   : > { %v1477_v45 = vpop.f32.mrf.mxu0 }
 0x3ab   : > { %v1722_v24 = vpop.f32.mrf.mxu1  ;;  %v1478_v21 = vadd.f32 %v2516_v41, %v1477_v45  ;;  %v1705_v11 = vadd.f32 %v3162_v60, %v1488_v4 }
 0x3ad   : > { %v1699_v8 = vadd.f32 %v1698_v23, %v1478_v21 }
 0x3ae   : > { %v3121_v50 = vpop.f32.mrf.mxu0 }
 0x3af   : > { %v3171_v49 = vpop.f32.mrf.mxu1  ;;  %v1508_v9 = vadd.f32 %v3121_v50, %v2516_v41 }
 0x3b0   : > { %v1497_v46 = vpop.f32.mrf.mxu0 }
 0x3b1   : > { %v1734_v27 = vpop.f32.mrf.mxu1  ;;  %v1498_v2 = vadd.f32 %v2516_v41, %v1497_v46  ;;  %v1717_v20 = vadd.f32 %v3165_v32, %v1508_v9 }
 0x3b3   : > { %v1711_v5 = vadd.f32 %v1710_v26, %v1498_v2 }
 0x3b4   : > { %v3124_v25 = vpop.f32.mrf.mxu0 }
 0x3b5   : > { %v1528_v7 = vadd.f32 %v3124_v25, %v2516_v41 }
 0x3b6   : > { %v1517_v12 = vpop.f32.mrf.mxu0 }
 0x3b7   : > { %v1518_v18 = vadd.f32 %v2516_v41, %v1517_v12  ;;  %v1729_v31 = vadd.f32 %v3168_v56, %v1528_v7 }
 0x3b9   : > { %v3127_v6 = vpop.f32.mrf.mxu0  ;;  %v1723_v28 = vadd.f32 %v1722_v24, %v1518_v18 }
 0x3ba   : > { %v1548_v57 = vadd.f32 %v3127_v6, %v2516_v41 }
 0x3bb   : > { %v1537_v14 = vpop.f32.mrf.mxu0 }
 0x3bc   : > { %v1538_v52 = vadd.f32 %v2516_v41, %v1537_v14  ;;  %v1741_v23 = vadd.f32 %v3171_v49, %v1548_v57 }
 0x3be   : > { %v1735_v25 = vadd.f32 %v1734_v27, %v1538_v52 }
 0x3c6   : > { %v3250_v13 = vpop.f32.mrf.mxu1 }
 0x3c8   : > { %v1982_v39 = vpop.f32.mrf.mxu1 }
 0x3cb   : > { %v3253_v10 = vpop.f32.mrf.mxu1 }
 0x3cd   : > { %v1998_v17 = vpop.f32.mrf.mxu1 }
 0x3cf   : > { %v3206_v0 = vpop.f32.mrf.mxu0 }
 0x3d0   : > { %v3256_v38 = vpop.f32.mrf.mxu1  ;;  %v1852_v47 = vadd.f32 %v3206_v0, %v1705_v11 }
 0x3d1   : > { %v1844_v42 = vpop.f32.mrf.mxu0 }
 0x3d2   : > { %v2014_v59 = vpop.f32.mrf.mxu1  ;;  %v1845_v15 = vadd.f32 %v1844_v42, %v1699_v8  ;;  %v1991_v16 = vadd.f32 %v3250_v13, %v1852_v47 }
 0x3d4   : > { %v1983_v48 = vadd.f32 %v1982_v39, %v1845_v15 }
 0x3d5   : > { %v3209_v1 = vpop.f32.mrf.mxu0 }
 0x3d6   : > { %v3259_v19 = vpop.f32.mrf.mxu1  ;;  %v1866_v22 = vadd.f32 %v3209_v1, %v1717_v20 }
 0x3d7   : > { %v1858_v63 = vpop.f32.mrf.mxu0 }
 0x3d8   : > { %v4771_v54 = vpop.f32.mrf.mxu1  ;;  %v1859_v37 = vadd.f32 %v1858_v63, %v1711_v5  ;;  %v2007_v34 = vadd.f32 %v3253_v10, %v1866_v22 }
 0x3da   : > { %v1999_v56 = vadd.f32 %v1998_v17, %v1859_v37 }
 0x3db   : > { %v3212_v3 = vpop.f32.mrf.mxu0 }
 0x3dc   : > { %v1880_v53 = vadd.f32 %v3212_v3, %v1729_v31 }
 0x3dd   : > { %v1872_v35 = vpop.f32.mrf.mxu0 }
 0x3de   : > { %v1873_v60 = vadd.f32 %v1872_v35, %v1723_v28  ;;  %v2023_v13 = vadd.f32 %v3256_v38, %v1880_v53  ;;  %v3483_v53 = vld [vmem:[%s3821_s13 + $0x8] sm:$0xff] }
 0x3e0   : > { %v3215_v33 = vpop.f32.mrf.mxu0  ;;  %v2015_v10 = vadd.f32 %v2014_v59, %v1873_v60  ;;  %v3485_v60 = vld [vmem:[%s3821_s13 + $0x18] sm:$0xff] }
 0x3e1   : > { %v1894_v46 = vadd.f32 %v3215_v33, %v1741_v23 }
 0x3e2   : > { %v1886_v55 = vpop.f32.mrf.mxu0 }
 0x3e3   : > { %v1887_v14 = vadd.f32 %v1886_v55, %v1735_v25  ;;  %v2039_v3 = vadd.f32 %v3259_v19, %v1894_v46  ;;  %v3488_v25 = vld [vmem:[%s3821_s13 + $0x20] sm:$0xff] }
 0x3e5   : > { %v2031_v21 = vadd.f32 %v4771_v54, %v1887_v14  ;;  %v3490_v14 = vld [vmem:[%s3821_s13 + $0x30] sm:$0xff] }
 0x3ee   : > { %v3338_v61 = vpop.f32.mrf.mxu1 }
 0x3f0   : > { %v2286_v30 = vpop.f32.mrf.mxu1 }
 0x3f2   : > { %v3341_v43 = vpop.f32.mrf.mxu1 }
 0x3f4   : > { %v2298_v51 = vpop.f32.mrf.mxu1 }
 0x3f5   : > { %v3294_v58 = vpop.f32.mrf.mxu0 }
 0x3f6   : > { %v2164_v36 = vadd.f32 %v3294_v58, %v1991_v16  ;;  %v3344_v44 = vpop.f32.mrf.mxu1 }
 0x3f7   : > { %v2157_v40 = vpop.f32.mrf.mxu0 }
 0x3f8   : > { %v2293_v29 = vadd.f32 %v3338_v61, %v2164_v36  ;;  %v2158_v62 = vadd.f32 %v2157_v40, %v1983_v48  ;;  %v2310_v0 = vpop.f32.mrf.mxu1 }
 0x3f9   : > { %v3297_v32 = vpop.f32.mrf.mxu0 }
 0x3fa   : > { %v2518_v45 = vmul.f32 -1.442695, %v2293_v29  ;;  %v2287_v26 = vadd.f32 %v2286_v30, %v2158_v62  ;;  %v2176_v50 = vadd.f32 %v3297_v32, %v2007_v34  ;;  %v3347_v35 = vpop.f32.mrf.mxu1  ;;  %v3484_v29 = vld [vmem:[%s3821_s13] sm:$0xff]  ;;  %v3486_v32 = vld [vmem:[%s3821_s13 + $0x10] sm:$0xff] }
 0x3fb   : > { %v2169_v12 = vpop.f32.mrf.mxu0 }
 0x3fc   : > { %3451 = vpow2.f32 %v2518_v45  ;;  %v2517_v6 = vmul.f32 -1.442695, %v2287_v26  ;;  %v2305_v39 = vadd.f32 %v3341_v43, %v2176_v50  ;;  %v2170_v24 = vadd.f32 %v2169_v12, %v1999_v56  ;;  %v2322_v8 = vpop.f32.mrf.mxu1  ;;  %v3487_v50 = vld [vmem:[%s3821_s13 + $0x28] sm:$0xff] }
 0x3fd   : > { %v3300_v42 = vpop.f32.mrf.mxu0 }
 0x3fe   : > { %3453 = vpow2.f32 %v2517_v6  ;;  %v2520_v49 = vmul.f32 -1.442695, %v2305_v39  ;;  %v2299_v1 = vadd.f32 %v2298_v51, %v2170_v24  ;;  %v2188_v63 = vadd.f32 %v3300_v42, %v2023_v13  ;;  %v3489_v6 = vld [vmem:[%s3821_s13 + $0x38] sm:$0xff] }
 0x3ff   : > { %v2181_v41 = vpop.f32.mrf.mxu0 }
 0x400   : > { %3455 = vpow2.f32 %v2520_v49  ;;  %v2519_v17 = vmul.f32 -1.442695, %v2299_v1  ;;  %v2317_v4 = vadd.f32 %v3344_v44, %v2188_v63  ;;  %v2182_v27 = vadd.f32 %v2181_v41, %v2015_v10 }
 0x401   : > { %v3303_v38 = vpop.f32.mrf.mxu0 }
 0x402   : > { %3457 = vpow2.f32 %v2519_v17  ;;  %v2522_v9 = vmul.f32 -1.442695, %v2317_v4  ;;  %v2311_v11 = vadd.f32 %v2310_v0, %v2182_v27  ;;  %v2200_v61 = vadd.f32 %v3303_v38, %v2039_v3 }
 0x403   : > { %v2193_v33 = vpop.f32.mrf.mxu0 }
 0x404   : > { %3459 = vpow2.f32 %v2522_v9  ;;  %v2521_v59 = vmul.f32 -1.442695, %v2311_v11  ;;  %v2329_v2 = vadd.f32 %v3347_v35, %v2200_v61  ;;  %v2194_v47 = vadd.f32 %v2193_v33, %v2031_v21 }
 0x406   : > { %3461 = vpow2.f32 %v2521_v59  ;;  %v2524_v19 = vmul.f32 -1.442695, %v2329_v2  ;;  %v2323_v30 = vadd.f32 %v2322_v8, %v2194_v47 }
 0x408   : > { %3463 = vpow2.f32 %v2524_v19  ;;  %v2523_v7 = vmul.f32 -1.442695, %v2323_v30 }
 0x409   : > { %v3452_v15 = vpop.eup %3451 }
 0x40a   : > { %v2357_v20 = vadd.f32 1.0, %v3452_v15  ;;  %3465 = vpow2.f32 %v2523_v7 }
 0x40b   : > { %v3454_v43 = vpop.eup %3453 }
 0x40c   : > { %3467 = vrcp.f32 %v2357_v20  ;;  %v2356_v54 = vadd.f32 1.0, %v3454_v43 }
 0x40d   : > { %v3456_v18 = vpop.eup %3455 }
 0x40e   : > { %3469 = vrcp.f32 %v2356_v54  ;;  %v2359_v55 = vadd.f32 1.0, %v3456_v18 }
 0x40f   : > { %v3458_v22 = vpop.eup %3457 }
 0x410   : > { %3471 = vrcp.f32 %v2359_v55  ;;  %v2358_v5 = vadd.f32 1.0, %v3458_v22 }
 0x411   : > { %v3460_v16 = vpop.eup %3459 }
 0x412   : > { %3473 = vrcp.f32 %v2358_v5  ;;  %v2361_v57 = vadd.f32 1.0, %v3460_v16 }
 0x413   : > { %v3462_v31 = vpop.eup %3461 }
 0x414   : > { %3475 = vrcp.f32 %v2361_v57  ;;  %v2360_v51 = vadd.f32 1.0, %v3462_v31 }
 0x415   : > { %v3464_v58 = vpop.eup %3463 }
 0x416   : > { %3477 = vrcp.f32 %v2360_v51  ;;  %v2363_v37 = vadd.f32 1.0, %v3464_v58 }
 0x417   : > { %v3466_v36 = vpop.eup %3465 }
 0x418   : > { %3479 = vrcp.f32 %v2363_v37  ;;  %v2362_v48 = vadd.f32 1.0, %v3466_v36 }
 0x419   : > { %v3468_v52 = vpop.eup %3467 }
 0x41a   : > { %v2381_v28 = vmul.f32 %v3483_v53, %v3468_v52  ;;  %3481 = vrcp.f32 %v2362_v48 }
 0x41b   : > { %v3470_v40 = vpop.eup %3469 }
 0x41c   : > { %2389 = vst [vmem:[%s4777_s12 + $0x8] sm:$0xff] %v2381_v28  ;;  %v2380_v62 = vmul.f32 %v3484_v29, %v3470_v40 }
 0x41d   : > { %v3472_v34 = vpop.eup %3471 }
 0x41e   : > { %2388 = vst [vmem:[%s4777_s12] sm:$0xff] %v2380_v62  ;;  %v2383_v23 = vmul.f32 %v3485_v60, %v3472_v34 }
 0x41f   : > { %v3474_v44 = vpop.eup %3473 }
 0x420   : > { %2391 = vst [vmem:[%s4777_s12 + $0x18] sm:$0xff] %v2383_v23  ;;  %v2382_v45 = vmul.f32 %v3486_v32, %v3474_v44 }
 0x421   : > { %v3476_v26 = vpop.eup %3475 }
 0x422   : > { %2390 = vst [vmem:[%s4777_s12 + $0x10] sm:$0xff] %v2382_v45  ;;  %v2385_v56 = vmul.f32 %v3487_v50, %v3476_v26 }
 0x423   : > { %v3478_v46 = vpop.eup %3477 }
 0x424   : > { %2393 = vst [vmem:[%s4777_s12 + $0x28] sm:$0xff] %v2385_v56  ;;  %v2384_v12 = vmul.f32 %v3488_v25, %v3478_v46 }
 0x425   : > { %v3480_v13 = vpop.eup %3479 }
 0x426   : > { %2392 = vst [vmem:[%s4777_s12 + $0x20] sm:$0xff] %v2384_v12  ;;  %v2387_v39 = vmul.f32 %v3489_v6, %v3480_v13 }
 0x427   : > { %v3482_v24 = vpop.eup %3481 }
 0x428   : > { %2395 = vst [vmem:[%s4777_s12 + $0x38] sm:$0xff] %v2387_v39  ;;  %v2386_v0 = vmul.f32 %v3490_v14, %v3482_v24 }
 0x42a   : > { %2394 = vst [vmem:[%s4777_s12 + $0x30] sm:$0xff] %v2386_v0 }
 0x42b   : > { %3584 = shalt.err (!%p3581_p3)
}
 0x42c   : > { %s3585_s13 = scalar_lea.hbm %s4796_s11, 1024  ;;  %s3589_s9 = scalar_lea.hbm %s4849_s5, 2048 }
 0x42d   : > { %p3586_p11 = scmp.ne.s32.totalorder %s4796_s11, %s3585_s13  ;;  %p3590_p4 = scmp.lt.s32.totalorder %s4796_s11, %s4849_s5 }
 0x42e   : > { %p3591_p6 = scmp.lt.s32.totalorder %s3589_s9, %s3585_s13 }
 0x42f   : > { %p3587_p9 = pnand %p3586_p11, %p4980_p2 }
 0x430   : > { %p3592_p8 = por %p3591_p6, %p3590_p4 }
 0x431   : > { %p3588_p1 = pneg %p3587_p9 }
 0x433   : > { %p3593_p5 = pnand %p3592_p8, %p3588_p1 }
 0x435   : > { %3596 = shalt.err (!%p3593_p5)
}
 0x436   : > { %s3647_s14 = smov 128   ;;  %s3648_s7 = smov 8  }
 0x437   : > { %3358 = dma.vmem_to_hbm [thread:$0]  (%p4980_p2), %s4798_s6, 1024, %s4796_s11, %s2397_s22, %s3647_s14, %s3647_s14, %s3648_s7  }
 0x438 PF: > { %s2425_s28 = sand.u32 1, %s3627_s18   ;;  %p4981_p7 = scmp.ne.s32.totalorder %s4913_s25, 0 }
 0x439   : > { %p4982_p12 = scmp.ge.s32.totalorder %s3639_s21, 2  ;;  %s2426_s17 = scalar_lea.sflag [#allocation4], %s2425_s28 }
 0x43b   : > { %p3372_p13 = pnand %p4982_p12, %p4981_p7 }
 0x43d   : > { %p3373_p0 = pneg %p3372_p13 }
 0x43f   : > { %3622 = dma.done.wait (%p3373_p0), %s2426_s17, 1024  }
 0x440   : > { %3624 = vsyncadd (%p3373_p0), %s2426_s17, 4294966272  ;;  %p19_p10 = scmp.ge.s32.totalorder %s3757_s15, 4   ;;  %s4983_s18 = smov %s3631_s19 }
 0x441   : > { %s4984_s19 = smov %s3635_s20  ;;  %s4985_s20 = smov %s3773_s27 }
 0x442   : > { %s4986_s21 = smov %s3757_s15  ;;  %21 = sbr.rel (!%p19_p10) target bundleno = 6 (0x6), region = 93 }
 0x447   :  { %2431 = vsyncpa [#allocation3], 1 }
 0x448   :  { %2433 = vsyncpa [#allocation3 + $0x1], 1 }
 0x449   :  { %2434 = vsyncpa [#allocation6], 1 }
 0x44a   :  { %2435 = vsyncpa [#allocation4], 1 }
 0x44b   :  { %2437 = vsyncpa [#allocation4 + $0x1], 1 }

</bundles_post_ra>
